<compile_context>
chip_gen: v5e
topology: v5e:2x2
jax: 0.10.0
libtpu: 0.0.40
codegen_flags: <defaults>
</compile_context>

<pallas_src>
import functools

import jax
import jax.numpy as jnp
from jax import lax
from jax.experimental import pallas as pl
from jax.experimental.pallas import tpu as pltpu


# ----------------------------------------------------------------------------
# tile pickers
# ----------------------------------------------------------------------------
def _pick_lane_tile(n, cap=1024):
    """Largest multiple of 128 that divides n (capped); else n itself
    (a full-dim block is always layout-legal)."""
    best = None
    t = 128
    while t <= min(n, cap):
        if n % t == 0:
            best = t
        t += 128
    return best if best is not None else n


def _pick_k_tile(k, cap=8):
    best = 1
    for t in range(1, min(k, cap) + 1):
        if k % t == 0:
            best = t
    return best


# ----------------------------------------------------------------------------
# Kernel 1: tiled per-batch pairwise squared distances
#   dist[b, i, j] = ||p_i - p_j||^2  via  ||a||^2 + ||b||^2 - 2 a.b
# ----------------------------------------------------------------------------
def _pdist_kernel(xi_ref, xj_ref, d_ref):
    xi = xi_ref[0]                                          # (C, ti) f32
    xj = xj_ref[0]                                          # (C, tj) f32
    gram = lax.dot_general(xi, xj, (((0,), (0,)), ((), ())),
                           preferred_element_type=jnp.float32)      # (ti, tj)
    # column vector of ||x_i||^2 via an MXU reduce (avoids an XLU transpose)
    sq_i = lax.dot_general(xi * xi, jnp.ones((xi.shape[0], 1), jnp.float32),
                           (((0,), (0,)), ((), ())),
                           preferred_element_type=jnp.float32)      # (ti, 1)
    sq_j = jnp.sum(xj * xj, axis=0, keepdims=True)                  # (1, tj)
    d_ref[0] = sq_i + sq_j - 2.0 * gram


def pairwise_sq_dist(pts, *, tile_cap=1024):
    # pts: (B, C, N) -> (B, N, N) f32
    pts = pts.astype(jnp.float32)
    B, C, N = pts.shape
    t = _pick_lane_tile(N, tile_cap)
    grid = (B, N // t, N // t)
    return pl.pallas_call(
        _pdist_kernel,
        out_shape=jax.ShapeDtypeStruct((B, N, N), jnp.float32),
        grid=grid,
        in_specs=[
            pl.BlockSpec((1, C, t), lambda b, i, j: (b, 0, i)),
            pl.BlockSpec((1, C, t), lambda b, i, j: (b, 0, j)),
        ],
        out_specs=pl.BlockSpec((1, t, t), lambda b, i, j: (b, i, j)),
        compiler_params=pltpu.CompilerParams(
            dimension_semantics=("parallel", "parallel", "parallel")),
    )(pts, pts)


# ----------------------------------------------------------------------------
# Kernel 2: fused edge-feature MLP (conv1/relu/conv2/relu/conv3) + max over k
#           + residual add, channels-first with the point axis on lanes.
#
#   x_ref   : (1, D, C, tn)  f32   central / residual features
#   nbr_ref : (1, kt, C, tn) bf16  gathered neighbor features (kt of k)
#   w1c_ref : (Chid, C)      bf16  (W1a - W1b)^T  (central path of conv1)
#   w1n_ref : (Chid, C)      bf16  W1b^T          (neighbor path of conv1)
#   w2_ref  : (Chid, Chid)   bf16
#   w3_ref  : (C, Chid)      bf16
#   b*_ref  : (*, 1)         f32
#   o_ref   : (1, D, C, tn)  f32
#   cproj   : (D, Chid, tn)  f32   cached conv1(central)+b1, shared across k
#   acc     : (D, C, tn)     f32   running max over k (conv3 bias deferred)
# ----------------------------------------------------------------------------
def _fused_edge_mlp_kernel(x_ref, nbr_ref, w1c_ref, w1n_ref, b1_ref,
                           w2_ref, b2_ref, w3_ref, b3_ref, o_ref,
                           cproj_ref, acc_ref):
    jt = pl.program_id(2)
    D = x_ref.shape[1]
    kt = nbr_ref.shape[1]
    cdt = w2_ref.dtype                                       # compute dtype

    @pl.when(jt == 0)
    def _init():
        # conv1 projection of the central features (+ conv1 bias): identical
        # for every neighbor, so compute once per row tile and cache it.
        for d in range(D):
            cd = x_ref[0, d].astype(cdt)                     # (C, tn)
            cproj_ref[d] = (jnp.dot(w1c_ref[...], cd,
                                    preferred_element_type=jnp.float32)
                            + b1_ref[...])
        acc_ref[...] = jnp.full(acc_ref.shape, -jnp.inf, jnp.float32)

    # kt neighbors per grid step, statically unrolled.
    for jj in range(kt):
        nb = nbr_ref[0, jj]                                  # (C, tn) bf16
        nproj = jnp.dot(w1n_ref[...], nb,
                        preferred_element_type=jnp.float32)  # (Chid, tn) f32
        for d in range(D):
            h1 = jnp.maximum(cproj_ref[d] + nproj, 0.0)
            h2 = jnp.maximum(
                jnp.dot(w2_ref[...], h1.astype(cdt),
                        preferred_element_type=jnp.float32) + b2_ref[...],
                0.0)
            y = jnp.dot(w3_ref[...], h2.astype(cdt),
                        preferred_element_type=jnp.float32)  # (C, tn)
            acc_ref[d] = jnp.maximum(acc_ref[d], y)

    @pl.when(jt == pl.num_programs(2) - 1)
    def _done():
        # conv3 bias (k-invariant, deferred past the max) + residual, f32,
        # lane-dense stores.
        for d in range(D):
            o_ref[0, d] = (acc_ref[d] + b3_ref[...]
                           + x_ref[0, d]).astype(o_ref.dtype)


def fused_edge_mlp(x, nbr, params, *, compute_dtype=jnp.bfloat16,
                   lane_tile_cap=1024, k_tile_cap=8):
    """x: (B, C, D, N) f32; nbr: (B, k, C, N); returns (B, C, D, N) f32."""
    B, C, D, N = x.shape
    k = nbr.shape[1]
    w1, b1, w2, b2, w3, b3 = params
    Chid = w1.shape[1]
    Cout = w3.shape[1]
    assert Cout == C and w1.shape[0] == 2 * C

    # Fold the [central, nbr - central] concat into conv1's weights:
    #   W1a @ c + W1b @ (nbr - c)  ==  (W1a - W1b) @ c + W1b @ nbr
    w1a, w1b = w1[:C], w1[C:]
    w1c_t = jnp.transpose(w1a - w1b).astype(compute_dtype)   # (Chid, C)
    w1n_t = jnp.transpose(w1b).astype(compute_dtype)         # (Chid, C)
    w2_t = jnp.transpose(w2).astype(compute_dtype)           # (Chid, Chid)
    w3_t = jnp.transpose(w3).astype(compute_dtype)           # (C, Chid)
    b1c = b1.reshape(Chid, 1).astype(jnp.float32)
    b2c = b2.reshape(Chid, 1).astype(jnp.float32)
    b3c = b3.reshape(Cout, 1).astype(jnp.float32)

    # Channels-first, per-d contiguous layout (small tensor; cheap transpose).
    x_r = jnp.transpose(x, (0, 2, 1, 3))                     # (B, D, C, N) f32
    nbr = nbr.astype(compute_dtype)                          # (B, k, C, N)

    tn = _pick_lane_tile(N, lane_tile_cap)
    kt = _pick_k_tile(k, k_tile_cap)
    grid = (B, N // tn, k // kt)

    out_r = pl.pallas_call(
        _fused_edge_mlp_kernel,
        out_shape=jax.ShapeDtypeStruct((B, D, C, N), x.dtype),
        grid=grid,
        in_specs=[
            pl.BlockSpec((1, D, C, tn), lambda b, nt, jt: (b, 0, 0, nt)),
            pl.BlockSpec((1, kt, C, tn), lambda b, nt, jt: (b, jt, 0, nt)),
            pl.BlockSpec((Chid, C), lambda b, nt, jt: (0, 0)),
            pl.BlockSpec((Chid, C), lambda b, nt, jt: (0, 0)),
            pl.BlockSpec((Chid, 1), lambda b, nt, jt: (0, 0)),
            pl.BlockSpec((Chid, Chid), lambda b, nt, jt: (0, 0)),
            pl.BlockSpec((Chid, 1), lambda b, nt, jt: (0, 0)),
            pl.BlockSpec((Cout, Chid), lambda b, nt, jt: (0, 0)),
            pl.BlockSpec((Cout, 1), lambda b, nt, jt: (0, 0)),
        ],
        out_specs=pl.BlockSpec((1, D, C, tn), lambda b, nt, jt: (b, 0, 0, nt)),
        scratch_shapes=[
            pltpu.VMEM((D, Chid, tn), jnp.float32),   # cached conv1(central)+b1
            pltpu.VMEM((D, Cout, tn), jnp.float32),   # max-over-k accumulator
        ],
        compiler_params=pltpu.CompilerParams(
            dimension_semantics=("parallel", "parallel", "arbitrary")),
    )(x_r, nbr, w1c_t, w1n_t, b1c, w2_t, b2c, w3_t, b3c)

    return jnp.transpose(out_r, (0, 2, 1, 3))                # (B, C, D, N)


# ----------------------------------------------------------------------------
# resconv forward
# ----------------------------------------------------------------------------
def resconv_forward(x, params, k, *, compute_dtype=jnp.bfloat16):
    # x: (B, C, D, N) with D == 3 (required by the PyTorch module's repeat(3))
    B, C, D, N = x.shape
    assert D == 3

    mean_pts = jnp.mean(x, axis=2)                           # (B, C, N) f32

    # --- KNN: distances in Pallas, top-k + gather in plain JAX --------------
    dist = pairwise_sq_dist(mean_pts)                        # (B, N, N)
    # TODO(synk): top_k and the dynamic neighbor gather stay in plain JAX; a
    # fully in-kernel gather (idx scalar-prefetched to SMEM + mean_pts resident
    # in VMEM) would remove the last k-sized HBM pass but needs dynamic
    # lane-gather support.
    _, idx = lax.top_k(-dist, k + 1)                         # (B, N, k+1)
    idx = idx[:, :, 1:]                                      # drop self

    # grouping_operation: gather neighbors directly in the kernel's preferred
    # (B, k, C, N) layout, already cast to the compute dtype (one XLA gather,
    # no materialized edge tensor).
    idx_t = jnp.transpose(idx, (0, 2, 1))                    # (B, k, N)
    b_ix = jnp.arange(B)[:, None, None, None]
    c_ix = jnp.arange(C)[None, None, :, None]
    nbr = mean_pts.astype(compute_dtype)[b_ix, c_ix, idx_t[:, :, None, :]]

    return fused_edge_mlp(x, nbr, params, compute_dtype=compute_dtype)


# ----------------------------------------------------------------------------
# Parameters (deterministic init, PyTorch Conv3d-style uniform(-1/sqrt(fan_in)))
# ----------------------------------------------------------------------------
def init_params(key, in_channels):
    c_in = in_channels * 2          # module's self.in_channels
    c_hid = c_in * 2                # expansionrate = 2
    c_out = c_in // 2               # == in_channels
    ks = jax.random.split(key, 6)

    def u(kk, shape, fan_in):
        bound = 1.0 / jnp.sqrt(float(fan_in))
        return jax.random.uniform(kk, shape, jnp.float32, -bound, bound)

    w1 = u(ks[0], (c_in, c_hid), c_in)
    b1 = u(ks[1], (1, c_hid), c_in)
    w2 = u(ks[2], (c_hid, c_hid), c_hid)
    b2 = u(ks[3], (1, c_hid), c_hid)
    w3 = u(ks[4], (c_hid, c_out), c_hid)
    b3 = u(ks[5], (1, c_out), c_hid)
    return (w1, b1, w2, b2, w3, b3)


# ----------------------------------------------------------------------------
# Pure-JAX reference (f32, HIGHEST matmul precision) for a sanity check
# ----------------------------------------------------------------------------
def resconv_reference(x, params, k):
    B, C, D, N = x.shape
    w1, b1, w2, b2, w3, b3 = params
    hp = lax.Precision.HIGHEST
    mean_pts = jnp.mean(x, axis=2)
    diff = mean_pts[:, :, :, None] - mean_pts[:, :, None, :]
    dist = jnp.sum(diff * diff, axis=1)                      # (B, N, N)
    _, idx = lax.top_k(-dist, k + 1)
    idx = idx[:, :, 1:]
    nbr = jax.vmap(lambda pc, ix: pc[:, ix])(mean_pts, idx)  # (B, C, N, k)
    nbr = jnp.transpose(nbr, (0, 1, 3, 2))                   # (B, C, k, N)
    central = jnp.broadcast_to(x[:, :, None, :, :], (B, C, k, D, N))
    nbr_e = jnp.broadcast_to(nbr[:, :, :, None, :], (B, C, k, D, N))
    edge = jnp.concatenate([central, nbr_e - central], axis=1)
    h1 = jax.nn.relu(jnp.einsum('bikdn,io->bokdn', edge, w1, precision=hp)
                     + b1.reshape(1, -1, 1, 1, 1))
    h2 = jax.nn.relu(jnp.einsum('bikdn,io->bokdn', h1, w2, precision=hp)
                     + b2.reshape(1, -1, 1, 1, 1))
    res = (jnp.einsum('bikdn,io->bokdn', h2, w3, precision=hp)
           + b3.reshape(1, -1, 1, 1, 1))
    res = jnp.max(res, axis=2)
    return res + x


if __name__ == "__main__":
    B, C, D, N, k = 2, 8, 3, 32, 4      # small shapes; D must be 3
    key = jax.random.PRNGKey(0)
    kx, kp = jax.random.split(key)
    x = jax.random.normal(kx, (B, C, D, N), jnp.float32)
    params = init_params(kp, C)

    fwd = jax.jit(functools.partial(resconv_forward, k=k))
    out = jax.block_until_ready(fwd(x, params))
    assert out.shape == (B, C, D, N)

    ref = resconv_reference(x, params, k)
    err = jnp.abs(out - ref)
    max_err = float(jnp.max(err))
    mean_err = float(jnp.mean(err))
    # bf16 compute (f32 accumulate) vs f32 reference: loose but structural-bug-
    # catching tolerances.
    assert max_err < 1e-1 and mean_err < 2e-2, (max_err, mean_err)
    print("KERNEL_OK")
</pallas_src>

<mosaic_0001>
module attributes {stable_mosaic.version = 11 : i64} {
  func.func @_pdist_kernel(%arg0: i32, %arg1: i32, %arg2: i32, %arg3: memref<1x8x32xf32, #tpu.memory_space<vmem>>, %arg4: memref<1x8x32xf32, #tpu.memory_space<vmem>>, %arg5: memref<1x32x32xf32, #tpu.memory_space<vmem>>) attributes {dimension_semantics = [#tpu.dimension_semantics<parallel>, #tpu.dimension_semantics<parallel>, #tpu.dimension_semantics<parallel>], iteration_bounds = array<i64: 2, 1, 1>, scalar_prefetch = 0 : i64, scratch_operands = 0 : i64, tpu.core_type = #tpu.core_type<tc>, window_params = [{transform_indices = @transform_0, window_bounds = array<i64: 1, 8, 32>}, {transform_indices = @transform_1, window_bounds = array<i64: 1, 8, 32>}, {transform_indices = @transform_2, window_bounds = array<i64: 1, 32, 32>}]} {
    %c0 = arith.constant 0 : index
    %c0_0 = arith.constant 0 : index
    %c0_1 = arith.constant 0 : index
    %0 = vector.load %arg3[%c0, %c0_0, %c0_1] : memref<1x8x32xf32, #tpu.memory_space<vmem>>, vector<1x8x32xf32>
    %1 = vector.shape_cast %0 : vector<1x8x32xf32> to vector<8x32xf32>
    %c0_2 = arith.constant 0 : index
    %c0_3 = arith.constant 0 : index
    %c0_4 = arith.constant 0 : index
    %2 = vector.load %arg4[%c0_2, %c0_3, %c0_4] : memref<1x8x32xf32, #tpu.memory_space<vmem>>, vector<1x8x32xf32>
    %3 = vector.shape_cast %2 : vector<1x8x32xf32> to vector<8x32xf32>
    %cst = arith.constant dense<0.000000e+00> : vector<32x32xf32>
    %4 = tpu.matmul %1, %3, %cst {dimension_numbers = #tpu.dot_dimension_numbers<[0], [0], [1], [1], [0, 1, 1, 1], [], []>} : vector<8x32xf32>, vector<8x32xf32>, vector<32x32xf32> -> vector<32x32xf32>
    %5 = arith.mulf %1, %1 : vector<8x32xf32>
    %cst_5 = arith.constant 1.000000e+00 : f32
    %6 = vector.broadcast %cst_5 : f32 to vector<8x1xf32>
    %cst_6 = arith.constant dense<0.000000e+00> : vector<32x1xf32>
    %7 = tpu.matmul %5, %6, %cst_6 {dimension_numbers = #tpu.dot_dimension_numbers<[0], [0], [1], [1], [0, 1, 1, 1], [], []>} : vector<8x32xf32>, vector<8x1xf32>, vector<32x1xf32> -> vector<32x1xf32>
    %8 = arith.mulf %3, %3 : vector<8x32xf32>
    %cst_7 = arith.constant dense<0.000000e+00> : vector<32xf32>
    %9 = vector.multi_reduction <add>, %8, %cst_7 [0] : vector<8x32xf32> to vector<32xf32>
    %10 = vector.shape_cast %9 : vector<32xf32> to vector<1x32xf32>
    %11 = vector.broadcast %7 : vector<32x1xf32> to vector<32x32xf32>
    %12 = vector.broadcast %10 : vector<1x32xf32> to vector<32x32xf32>
    %13 = arith.addf %11, %12 : vector<32x32xf32>
    %cst_8 = arith.constant 2.000000e+00 : f32
    %14 = vector.broadcast %cst_8 : f32 to vector<32x32xf32>
    %15 = arith.mulf %14, %4 : vector<32x32xf32>
    %16 = arith.subf %13, %15 : vector<32x32xf32>
    %c0_9 = arith.constant 0 : index
    %c0_10 = arith.constant 0 : index
    %c0_11 = arith.constant 0 : index
    %17 = vector.load %arg5[%c0_9, %c0_10, %c0_11] : memref<1x32x32xf32, #tpu.memory_space<vmem>>, vector<1x32x32xf32>
    %18 = vector.shape_cast %17 : vector<1x32x32xf32> to vector<32x32xf32>
    %19 = vector.shape_cast %16 : vector<32x32xf32> to vector<1x32x32xf32>
    tpu.vector_store %arg5[%c0_9, %c0_10, %c0_11], %19 {strides = array<i32>} : memref<1x32x32xf32, #tpu.memory_space<vmem>>, vector<1x32x32xf32>,
    return
  }
  func.func @transform_0(%arg0: i32, %arg1: i32, %arg2: i32) -> (i32, i32, i32) {
    %c0_i32 = arith.constant 0 : i32
    %c0_i32_0 = arith.constant 0 : i32
    return %arg0, %c0_i32, %arg1 : i32, i32, i32
  }
  func.func @transform_1(%arg0: i32, %arg1: i32, %arg2: i32) -> (i32, i32, i32) {
    %c0_i32 = arith.constant 0 : i32
    %c0_i32_0 = arith.constant 0 : i32
    return %arg0, %c0_i32, %arg2 : i32, i32, i32
  }
  func.func @transform_2(%arg0: i32, %arg1: i32, %arg2: i32) -> (i32, i32, i32) {
    %c0_i32 = arith.constant 0 : i32
    return %arg0, %arg1, %arg2 : i32, i32, i32
  }
}

module attributes {stable_mosaic.version = 11 : i64} {
  func.func @_fused_edge_mlp_kernel(%arg0: i32, %arg1: i32, %arg2: i32, %arg3: memref<1x3x8x32xf32, #tpu.memory_space<vmem>>, %arg4: memref<1x4x8x32xbf16, #tpu.memory_space<vmem>>, %arg5: memref<32x8xbf16, #tpu.memory_space<vmem>>, %arg6: memref<32x8xbf16, #tpu.memory_space<vmem>>, %arg7: memref<32x1xf32, #tpu.memory_space<vmem>>, %arg8: memref<32x32xbf16, #tpu.memory_space<vmem>>, %arg9: memref<32x1xf32, #tpu.memory_space<vmem>>, %arg10: memref<8x32xbf16, #tpu.memory_space<vmem>>, %arg11: memref<8x1xf32, #tpu.memory_space<vmem>>, %arg12: memref<1x3x8x32xf32, #tpu.memory_space<vmem>>, %arg13: memref<3x32x32xf32, #tpu.memory_space<vmem>>, %arg14: memref<3x8x32xf32, #tpu.memory_space<vmem>>) attributes {dimension_semantics = [#tpu.dimension_semantics<parallel>, #tpu.dimension_semantics<parallel>, #tpu.dimension_semantics<arbitrary>], iteration_bounds = array<i64: 2, 1, 1>, scalar_prefetch = 0 : i64, scratch_operands = 2 : i64, tpu.core_type = #tpu.core_type<tc>, window_params = [{transform_indices = @transform_0, window_bounds = array<i64: 1, 3, 8, 32>}, {transform_indices = @transform_1, window_bounds = array<i64: 1, 4, 8, 32>}, {pipeline_mode = #tpu.pipeline_mode<synchronous>, transform_indices = @transform_2, window_bounds = array<i64: 32, 8>}, {pipeline_mode = #tpu.pipeline_mode<synchronous>, transform_indices = @transform_3, window_bounds = array<i64: 32, 8>}, {pipeline_mode = #tpu.pipeline_mode<synchronous>, transform_indices = @transform_4, window_bounds = array<i64: 32, 1>}, {pipeline_mode = #tpu.pipeline_mode<synchronous>, transform_indices = @transform_5, window_bounds = array<i64: 32, 32>}, {pipeline_mode = #tpu.pipeline_mode<synchronous>, transform_indices = @transform_6, window_bounds = array<i64: 32, 1>}, {pipeline_mode = #tpu.pipeline_mode<synchronous>, transform_indices = @transform_7, window_bounds = array<i64: 8, 32>}, {pipeline_mode = #tpu.pipeline_mode<synchronous>, transform_indices = @transform_8, window_bounds = array<i64: 8, 1>}, {transform_indices = @transform_9, window_bounds = array<i64: 1, 3, 8, 32>}]} {
    %c0_i32 = arith.constant 0 : i32
    %0 = arith.cmpi eq, %arg2, %c0_i32 : i32
    %1 = arith.extui %0 : i1 to i32
    %c0_i32_0 = arith.constant 0 : i32
    %2 = arith.cmpi ne, %1, %c0_i32_0 : i32
    scf.if %2 {
      %c0_254 = arith.constant 0 : index
      %c0_255 = arith.constant 0 : index
      %c0_256 = arith.constant 0 : index
      %c0_257 = arith.constant 0 : index
      %286 = vector.load %arg3[%c0_254, %c0_255, %c0_256, %c0_257] : memref<1x3x8x32xf32, #tpu.memory_space<vmem>>, vector<1x1x8x32xf32>
      %287 = vector.shape_cast %286 : vector<1x1x8x32xf32> to vector<8x32xf32>
      %288 = arith.truncf %287 : vector<8x32xf32> to vector<8x32xbf16>
      %c0_258 = arith.constant 0 : index
      %c0_259 = arith.constant 0 : index
      %289 = vector.load %arg5[%c0_258, %c0_259] : memref<32x8xbf16, #tpu.memory_space<vmem>>, vector<32x8xbf16>
      %cst_260 = arith.constant dense<0.000000e+00> : vector<32x32xf32>
      %290 = tpu.matmul %289, %288, %cst_260 {dimension_numbers = #tpu.dot_dimension_numbers<[1], [0], [0], [1], [0, 0, 1, 1], [], []>} : vector<32x8xbf16>, vector<8x32xbf16>, vector<32x32xf32> -> vector<32x32xf32>
      %c0_261 = arith.constant 0 : index
      %c0_262 = arith.constant 0 : index
      %291 = vector.load %arg7[%c0_261, %c0_262] : memref<32x1xf32, #tpu.memory_space<vmem>>, vector<32x1xf32>
      %292 = vector.broadcast %291 : vector<32x1xf32> to vector<32x32xf32>
      %293 = arith.addf %290, %292 : vector<32x32xf32>
      %c0_263 = arith.constant 0 : index
      %c0_264 = arith.constant 0 : index
      %c0_265 = arith.constant 0 : index
      %294 = vector.load %arg13[%c0_263, %c0_264, %c0_265] : memref<3x32x32xf32, #tpu.memory_space<vmem>>, vector<1x32x32xf32>
      %295 = vector.shape_cast %294 : vector<1x32x32xf32> to vector<32x32xf32>
      %296 = vector.shape_cast %293 : vector<32x32xf32> to vector<1x32x32xf32>
      tpu.vector_store %arg13[%c0_263, %c0_264, %c0_265], %296 {strides = array<i32>} : memref<3x32x32xf32, #tpu.memory_space<vmem>>, vector<1x32x32xf32>,
      %c0_266 = arith.constant 0 : index
      %c1_267 = arith.constant 1 : index
      %c0_268 = arith.constant 0 : index
      %c0_269 = arith.constant 0 : index
      %297 = vector.load %arg3[%c0_266, %c1_267, %c0_268, %c0_269] : memref<1x3x8x32xf32, #tpu.memory_space<vmem>>, vector<1x1x8x32xf32>
      %298 = vector.shape_cast %297 : vector<1x1x8x32xf32> to vector<8x32xf32>
      %299 = arith.truncf %298 : vector<8x32xf32> to vector<8x32xbf16>
      %c0_270 = arith.constant 0 : index
      %c0_271 = arith.constant 0 : index
      %300 = vector.load %arg5[%c0_270, %c0_271] : memref<32x8xbf16, #tpu.memory_space<vmem>>, vector<32x8xbf16>
      %cst_272 = arith.constant dense<0.000000e+00> : vector<32x32xf32>
      %301 = tpu.matmul %300, %299, %cst_272 {dimension_numbers = #tpu.dot_dimension_numbers<[1], [0], [0], [1], [0, 0, 1, 1], [], []>} : vector<32x8xbf16>, vector<8x32xbf16>, vector<32x32xf32> -> vector<32x32xf32>
      %c0_273 = arith.constant 0 : index
      %c0_274 = arith.constant 0 : index
      %302 = vector.load %arg7[%c0_273, %c0_274] : memref<32x1xf32, #tpu.memory_space<vmem>>, vector<32x1xf32>
      %303 = vector.broadcast %302 : vector<32x1xf32> to vector<32x32xf32>
      %304 = arith.addf %301, %303 : vector<32x32xf32>
      %c1_275 = arith.constant 1 : index
      %c0_276 = arith.constant 0 : index
      %c0_277 = arith.constant 0 : index
      %305 = vector.load %arg13[%c1_275, %c0_276, %c0_277] : memref<3x32x32xf32, #tpu.memory_space<vmem>>, vector<1x32x32xf32>
      %306 = vector.shape_cast %305 : vector<1x32x32xf32> to vector<32x32xf32>
      %307 = vector.shape_cast %304 : vector<32x32xf32> to vector<1x32x32xf32>
      tpu.vector_store %arg13[%c1_275, %c0_276, %c0_277], %307 {strides = array<i32>} : memref<3x32x32xf32, #tpu.memory_space<vmem>>, vector<1x32x32xf32>,
      %c0_278 = arith.constant 0 : index
      %c2_279 = arith.constant 2 : index
      %c0_280 = arith.constant 0 : index
      %c0_281 = arith.constant 0 : index
      %308 = vector.load %arg3[%c0_278, %c2_279, %c0_280, %c0_281] : memref<1x3x8x32xf32, #tpu.memory_space<vmem>>, vector<1x1x8x32xf32>
      %309 = vector.shape_cast %308 : vector<1x1x8x32xf32> to vector<8x32xf32>
      %310 = arith.truncf %309 : vector<8x32xf32> to vector<8x32xbf16>
      %c0_282 = arith.constant 0 : index
      %c0_283 = arith.constant 0 : index
      %311 = vector.load %arg5[%c0_282, %c0_283] : memref<32x8xbf16, #tpu.memory_space<vmem>>, vector<32x8xbf16>
      %cst_284 = arith.constant dense<0.000000e+00> : vector<32x32xf32>
      %312 = tpu.matmul %311, %310, %cst_284 {dimension_numbers = #tpu.dot_dimension_numbers<[1], [0], [0], [1], [0, 0, 1, 1], [], []>} : vector<32x8xbf16>, vector<8x32xbf16>, vector<32x32xf32> -> vector<32x32xf32>
      %c0_285 = arith.constant 0 : index
      %c0_286 = arith.constant 0 : index
      %313 = vector.load %arg7[%c0_285, %c0_286] : memref<32x1xf32, #tpu.memory_space<vmem>>, vector<32x1xf32>
      %314 = vector.broadcast %313 : vector<32x1xf32> to vector<32x32xf32>
      %315 = arith.addf %312, %314 : vector<32x32xf32>
      %c2_287 = arith.constant 2 : index
      %c0_288 = arith.constant 0 : index
      %c0_289 = arith.constant 0 : index
      %316 = vector.load %arg13[%c2_287, %c0_288, %c0_289] : memref<3x32x32xf32, #tpu.memory_space<vmem>>, vector<1x32x32xf32>
      %317 = vector.shape_cast %316 : vector<1x32x32xf32> to vector<32x32xf32>
      %318 = vector.shape_cast %315 : vector<32x32xf32> to vector<1x32x32xf32>
      tpu.vector_store %arg13[%c2_287, %c0_288, %c0_289], %318 {strides = array<i32>} : memref<3x32x32xf32, #tpu.memory_space<vmem>>, vector<1x32x32xf32>,
      %cst_290 = arith.constant 0xFF800000 : f32
      %319 = vector.broadcast %cst_290 : f32 to vector<3x8x32xf32>
      %c0_291 = arith.constant 0 : index
      %c0_292 = arith.constant 0 : index
      %c0_293 = arith.constant 0 : index
      %320 = vector.load %arg14[%c0_291, %c0_292, %c0_293] : memref<3x8x32xf32, #tpu.memory_space<vmem>>, vector<3x8x32xf32>
      tpu.vector_store %arg14[%c0_291, %c0_292, %c0_293], %319 {strides = array<i32>} : memref<3x8x32xf32, #tpu.memory_space<vmem>>, vector<3x8x32xf32>,
    } else {
    }
    %c0 = arith.constant 0 : index
    %c0_1 = arith.constant 0 : index
    %c0_2 = arith.constant 0 : index
    %c0_3 = arith.constant 0 : index
    %3 = vector.load %arg4[%c0, %c0_1, %c0_2, %c0_3] : memref<1x4x8x32xbf16, #tpu.memory_space<vmem>>, vector<1x1x8x32xbf16>
    %4 = vector.shape_cast %3 : vector<1x1x8x32xbf16> to vector<8x32xbf16>
    %c0_4 = arith.constant 0 : index
    %c0_5 = arith.constant 0 : index
    %5 = vector.load %arg6[%c0_4, %c0_5] : memref<32x8xbf16, #tpu.memory_space<vmem>>, vector<32x8xbf16>
    %cst = arith.constant dense<0.000000e+00> : vector<32x32xf32>
    %6 = tpu.matmul %5, %4, %cst {dimension_numbers = #tpu.dot_dimension_numbers<[1], [0], [0], [1], [0, 0, 1, 1], [], []>} : vector<32x8xbf16>, vector<8x32xbf16>, vector<32x32xf32> -> vector<32x32xf32>
    %c0_6 = arith.constant 0 : index
    %c0_7 = arith.constant 0 : index
    %c0_8 = arith.constant 0 : index
    %7 = vector.load %arg13[%c0_6, %c0_7, %c0_8] : memref<3x32x32xf32, #tpu.memory_space<vmem>>, vector<1x32x32xf32>
    %8 = vector.shape_cast %7 : vector<1x32x32xf32> to vector<32x32xf32>
    %9 = arith.addf %8, %6 : vector<32x32xf32>
    %cst_9 = arith.constant 0.000000e+00 : f32
    %10 = vector.broadcast %cst_9 : f32 to vector<32x32xf32>
    %11 = arith.maximumf %9, %10 : vector<32x32xf32>
    %c0_10 = arith.constant 0 : index
    %c0_11 = arith.constant 0 : index
    %12 = vector.load %arg8[%c0_10, %c0_11] : memref<32x32xbf16, #tpu.memory_space<vmem>>, vector<32x32xbf16>
    %13 = arith.truncf %11 : vector<32x32xf32> to vector<32x32xbf16>
    %cst_12 = arith.constant dense<0.000000e+00> : vector<32x32xf32>
    %14 = tpu.matmul %12, %13, %cst_12 {dimension_numbers = #tpu.dot_dimension_numbers<[1], [0], [0], [1], [0, 0, 1, 1], [], []>} : vector<32x32xbf16>, vector<32x32xbf16>, vector<32x32xf32> -> vector<32x32xf32>
    %c0_13 = arith.constant 0 : index
    %c0_14 = arith.constant 0 : index
    %15 = vector.load %arg9[%c0_13, %c0_14] : memref<32x1xf32, #tpu.memory_space<vmem>>, vector<32x1xf32>
    %16 = vector.broadcast %15 : vector<32x1xf32> to vector<32x32xf32>
    %17 = arith.addf %14, %16 : vector<32x32xf32>
    %cst_15 = arith.constant 0.000000e+00 : f32
    %18 = vector.broadcast %cst_15 : f32 to vector<32x32xf32>
    %19 = arith.maximumf %17, %18 : vector<32x32xf32>
    %c0_16 = arith.constant 0 : index
    %c0_17 = arith.constant 0 : index
    %20 = vector.load %arg10[%c0_16, %c0_17] : memref<8x32xbf16, #tpu.memory_space<vmem>>, vector<8x32xbf16>
    %21 = arith.truncf %19 : vector<32x32xf32> to vector<32x32xbf16>
    %cst_18 = arith.constant dense<0.000000e+00> : vector<8x32xf32>
    %22 = tpu.matmul %20, %21, %cst_18 {dimension_numbers = #tpu.dot_dimension_numbers<[1], [0], [0], [1], [0, 0, 1, 1], [], []>} : vector<8x32xbf16>, vector<32x32xbf16>, vector<8x32xf32> -> vector<8x32xf32>
    %c0_19 = arith.constant 0 : index
    %c0_20 = arith.constant 0 : index
    %c0_21 = arith.constant 0 : index
    %23 = vector.load %arg14[%c0_19, %c0_20, %c0_21] : memref<3x8x32xf32, #tpu.memory_space<vmem>>, vector<1x8x32xf32>
    %24 = vector.shape_cast %23 : vector<1x8x32xf32> to vector<8x32xf32>
    %25 = arith.maximumf %24, %22 : vector<8x32xf32>
    %c0_22 = arith.constant 0 : index
    %c0_23 = arith.constant 0 : index
    %c0_24 = arith.constant 0 : index
    %26 = vector.load %arg14[%c0_22, %c0_23, %c0_24] : memref<3x8x32xf32, #tpu.memory_space<vmem>>, vector<1x8x32xf32>
    %27 = vector.shape_cast %26 : vector<1x8x32xf32> to vector<8x32xf32>
    %28 = vector.shape_cast %25 : vector<8x32xf32> to vector<1x8x32xf32>
    tpu.vector_store %arg14[%c0_22, %c0_23, %c0_24], %28 {strides = array<i32>} : memref<3x8x32xf32, #tpu.memory_space<vmem>>, vector<1x8x32xf32>,
    %c1 = arith.constant 1 : index
    %c0_25 = arith.constant 0 : index
    %c0_26 = arith.constant 0 : index
    %29 = vector.load %arg13[%c1, %c0_25, %c0_26] : memref<3x32x32xf32, #tpu.memory_space<vmem>>, vector<1x32x32xf32>
    %30 = vector.shape_cast %29 : vector<1x32x32xf32> to vector<32x32xf32>
    %31 = arith.addf %30, %6 : vector<32x32xf32>
    %cst_27 = arith.constant 0.000000e+00 : f32
    %32 = vector.broadcast %cst_27 : f32 to vector<32x32xf32>
    %33 = arith.maximumf %31, %32 : vector<32x32xf32>
    %c0_28 = arith.constant 0 : index
    %c0_29 = arith.constant 0 : index
    %34 = vector.load %arg8[%c0_28, %c0_29] : memref<32x32xbf16, #tpu.memory_space<vmem>>, vector<32x32xbf16>
    %35 = arith.truncf %33 : vector<32x32xf32> to vector<32x32xbf16>
    %cst_30 = arith.constant dense<0.000000e+00> : vector<32x32xf32>
    %36 = tpu.matmul %34, %35, %cst_30 {dimension_numbers = #tpu.dot_dimension_numbers<[1], [0], [0], [1], [0, 0, 1, 1], [], []>} : vector<32x32xbf16>, vector<32x32xbf16>, vector<32x32xf32> -> vector<32x32xf32>
    %c0_31 = arith.constant 0 : index
    %c0_32 = arith.constant 0 : index
    %37 = vector.load %arg9[%c0_31, %c0_32] : memref<32x1xf32, #tpu.memory_space<vmem>>, vector<32x1xf32>
    %38 = vector.broadcast %37 : vector<32x1xf32> to vector<32x32xf32>
    %39 = arith.addf %36, %38 : vector<32x32xf32>
    %cst_33 = arith.constant 0.000000e+00 : f32
    %40 = vector.broadcast %cst_33 : f32 to vector<32x32xf32>
    %41 = arith.maximumf %39, %40 : vector<32x32xf32>
    %c0_34 = arith.constant 0 : index
    %c0_35 = arith.constant 0 : index
    %42 = vector.load %arg10[%c0_34, %c0_35] : memref<8x32xbf16, #tpu.memory_space<vmem>>, vector<8x32xbf16>
    %43 = arith.truncf %41 : vector<32x32xf32> to vector<32x32xbf16>
    %cst_36 = arith.constant dense<0.000000e+00> : vector<8x32xf32>
    %44 = tpu.matmul %42, %43, %cst_36 {dimension_numbers = #tpu.dot_dimension_numbers<[1], [0], [0], [1], [0, 0, 1, 1], [], []>} : vector<8x32xbf16>, vector<32x32xbf16>, vector<8x32xf32> -> vector<8x32xf32>
    %c1_37 = arith.constant 1 : index
    %c0_38 = arith.constant 0 : index
    %c0_39 = arith.constant 0 : index
    %45 = vector.load %arg14[%c1_37, %c0_38, %c0_39] : memref<3x8x32xf32, #tpu.memory_space<vmem>>, vector<1x8x32xf32>
    %46 = vector.shape_cast %45 : vector<1x8x32xf32> to vector<8x32xf32>
    %47 = arith.maximumf %46, %44 : vector<8x32xf32>
    %c1_40 = arith.constant 1 : index
    %c0_41 = arith.constant 0 : index
    %c0_42 = arith.constant 0 : index
    %48 = vector.load %arg14[%c1_40, %c0_41, %c0_42] : memref<3x8x32xf32, #tpu.memory_space<vmem>>, vector<1x8x32xf32>
    %49 = vector.shape_cast %48 : vector<1x8x32xf32> to vector<8x32xf32>
    %50 = vector.shape_cast %47 : vector<8x32xf32> to vector<1x8x32xf32>
    tpu.vector_store %arg14[%c1_40, %c0_41, %c0_42], %50 {strides = array<i32>} : memref<3x8x32xf32, #tpu.memory_space<vmem>>, vector<1x8x32xf32>,
    %c2 = arith.constant 2 : index
    %c0_43 = arith.constant 0 : index
    %c0_44 = arith.constant 0 : index
    %51 = vector.load %arg13[%c2, %c0_43, %c0_44] : memref<3x32x32xf32, #tpu.memory_space<vmem>>, vector<1x32x32xf32>
    %52 = vector.shape_cast %51 : vector<1x32x32xf32> to vector<32x32xf32>
    %53 = arith.addf %52, %6 : vector<32x32xf32>
    %cst_45 = arith.constant 0.000000e+00 : f32
    %54 = vector.broadcast %cst_45 : f32 to vector<32x32xf32>
    %55 = arith.maximumf %53, %54 : vector<32x32xf32>
    %c0_46 = arith.constant 0 : index
    %c0_47 = arith.constant 0 : index
    %56 = vector.load %arg8[%c0_46, %c0_47] : memref<32x32xbf16, #tpu.memory_space<vmem>>, vector<32x32xbf16>
    %57 = arith.truncf %55 : vector<32x32xf32> to vector<32x32xbf16>
    %cst_48 = arith.constant dense<0.000000e+00> : vector<32x32xf32>
    %58 = tpu.matmul %56, %57, %cst_48 {dimension_numbers = #tpu.dot_dimension_numbers<[1], [0], [0], [1], [0, 0, 1, 1], [], []>} : vector<32x32xbf16>, vector<32x32xbf16>, vector<32x32xf32> -> vector<32x32xf32>
    %c0_49 = arith.constant 0 : index
    %c0_50 = arith.constant 0 : index
    %59 = vector.load %arg9[%c0_49, %c0_50] : memref<32x1xf32, #tpu.memory_space<vmem>>, vector<32x1xf32>
    %60 = vector.broadcast %59 : vector<32x1xf32> to vector<32x32xf32>
    %61 = arith.addf %58, %60 : vector<32x32xf32>
    %cst_51 = arith.constant 0.000000e+00 : f32
    %62 = vector.broadcast %cst_51 : f32 to vector<32x32xf32>
    %63 = arith.maximumf %61, %62 : vector<32x32xf32>
    %c0_52 = arith.constant 0 : index
    %c0_53 = arith.constant 0 : index
    %64 = vector.load %arg10[%c0_52, %c0_53] : memref<8x32xbf16, #tpu.memory_space<vmem>>, vector<8x32xbf16>
    %65 = arith.truncf %63 : vector<32x32xf32> to vector<32x32xbf16>
    %cst_54 = arith.constant dense<0.000000e+00> : vector<8x32xf32>
    %66 = tpu.matmul %64, %65, %cst_54 {dimension_numbers = #tpu.dot_dimension_numbers<[1], [0], [0], [1], [0, 0, 1, 1], [], []>} : vector<8x32xbf16>, vector<32x32xbf16>, vector<8x32xf32> -> vector<8x32xf32>
    %c2_55 = arith.constant 2 : index
    %c0_56 = arith.constant 0 : index
    %c0_57 = arith.constant 0 : index
    %67 = vector.load %arg14[%c2_55, %c0_56, %c0_57] : memref<3x8x32xf32, #tpu.memory_space<vmem>>, vector<1x8x32xf32>
    %68 = vector.shape_cast %67 : vector<1x8x32xf32> to vector<8x32xf32>
    %69 = arith.maximumf %68, %66 : vector<8x32xf32>
    %c2_58 = arith.constant 2 : index
    %c0_59 = arith.constant 0 : index
    %c0_60 = arith.constant 0 : index
    %70 = vector.load %arg14[%c2_58, %c0_59, %c0_60] : memref<3x8x32xf32, #tpu.memory_space<vmem>>, vector<1x8x32xf32>
    %71 = vector.shape_cast %70 : vector<1x8x32xf32> to vector<8x32xf32>
    %72 = vector.shape_cast %69 : vector<8x32xf32> to vector<1x8x32xf32>
    tpu.vector_store %arg14[%c2_58, %c0_59, %c0_60], %72 {strides = array<i32>} : memref<3x8x32xf32, #tpu.memory_space<vmem>>, vector<1x8x32xf32>,
    %c0_61 = arith.constant 0 : index
    %c1_62 = arith.constant 1 : index
    %c0_63 = arith.constant 0 : index
    %c0_64 = arith.constant 0 : index
    %73 = vector.load %arg4[%c0_61, %c1_62, %c0_63, %c0_64] : memref<1x4x8x32xbf16, #tpu.memory_space<vmem>>, vector<1x1x8x32xbf16>
    %74 = vector.shape_cast %73 : vector<1x1x8x32xbf16> to vector<8x32xbf16>
    %c0_65 = arith.constant 0 : index
    %c0_66 = arith.constant 0 : index
    %75 = vector.load %arg6[%c0_65, %c0_66] : memref<32x8xbf16, #tpu.memory_space<vmem>>, vector<32x8xbf16>
    %cst_67 = arith.constant dense<0.000000e+00> : vector<32x32xf32>
    %76 = tpu.matmul %75, %74, %cst_67 {dimension_numbers = #tpu.dot_dimension_numbers<[1], [0], [0], [1], [0, 0, 1, 1], [], []>} : vector<32x8xbf16>, vector<8x32xbf16>, vector<32x32xf32> -> vector<32x32xf32>
    %c0_68 = arith.constant 0 : index
    %c0_69 = arith.constant 0 : index
    %c0_70 = arith.constant 0 : index
    %77 = vector.load %arg13[%c0_68, %c0_69, %c0_70] : memref<3x32x32xf32, #tpu.memory_space<vmem>>, vector<1x32x32xf32>
    %78 = vector.shape_cast %77 : vector<1x32x32xf32> to vector<32x32xf32>
    %79 = arith.addf %78, %76 : vector<32x32xf32>
    %cst_71 = arith.constant 0.000000e+00 : f32
    %80 = vector.broadcast %cst_71 : f32 to vector<32x32xf32>
    %81 = arith.maximumf %79, %80 : vector<32x32xf32>
    %c0_72 = arith.constant 0 : index
    %c0_73 = arith.constant 0 : index
    %82 = vector.load %arg8[%c0_72, %c0_73] : memref<32x32xbf16, #tpu.memory_space<vmem>>, vector<32x32xbf16>
    %83 = arith.truncf %81 : vector<32x32xf32> to vector<32x32xbf16>
    %cst_74 = arith.constant dense<0.000000e+00> : vector<32x32xf32>
    %84 = tpu.matmul %82, %83, %cst_74 {dimension_numbers = #tpu.dot_dimension_numbers<[1], [0], [0], [1], [0, 0, 1, 1], [], []>} : vector<32x32xbf16>, vector<32x32xbf16>, vector<32x32xf32> -> vector<32x32xf32>
    %c0_75 = arith.constant 0 : index
    %c0_76 = arith.constant 0 : index
    %85 = vector.load %arg9[%c0_75, %c0_76] : memref<32x1xf32, #tpu.memory_space<vmem>>, vector<32x1xf32>
    %86 = vector.broadcast %85 : vector<32x1xf32> to vector<32x32xf32>
    %87 = arith.addf %84, %86 : vector<32x32xf32>
    %cst_77 = arith.constant 0.000000e+00 : f32
    %88 = vector.broadcast %cst_77 : f32 to vector<32x32xf32>
    %89 = arith.maximumf %87, %88 : vector<32x32xf32>
    %c0_78 = arith.constant 0 : index
    %c0_79 = arith.constant 0 : index
    %90 = vector.load %arg10[%c0_78, %c0_79] : memref<8x32xbf16, #tpu.memory_space<vmem>>, vector<8x32xbf16>
    %91 = arith.truncf %89 : vector<32x32xf32> to vector<32x32xbf16>
    %cst_80 = arith.constant dense<0.000000e+00> : vector<8x32xf32>
    %92 = tpu.matmul %90, %91, %cst_80 {dimension_numbers = #tpu.dot_dimension_numbers<[1], [0], [0], [1], [0, 0, 1, 1], [], []>} : vector<8x32xbf16>, vector<32x32xbf16>, vector<8x32xf32> -> vector<8x32xf32>
    %c0_81 = arith.constant 0 : index
    %c0_82 = arith.constant 0 : index
    %c0_83 = arith.constant 0 : index
    %93 = vector.load %arg14[%c0_81, %c0_82, %c0_83] : memref<3x8x32xf32, #tpu.memory_space<vmem>>, vector<1x8x32xf32>
    %94 = vector.shape_cast %93 : vector<1x8x32xf32> to vector<8x32xf32>
    %95 = arith.maximumf %94, %92 : vector<8x32xf32>
    %c0_84 = arith.constant 0 : index
    %c0_85 = arith.constant 0 : index
    %c0_86 = arith.constant 0 : index
    %96 = vector.load %arg14[%c0_84, %c0_85, %c0_86] : memref<3x8x32xf32, #tpu.memory_space<vmem>>, vector<1x8x32xf32>
    %97 = vector.shape_cast %96 : vector<1x8x32xf32> to vector<8x32xf32>
    %98 = vector.shape_cast %95 : vector<8x32xf32> to vector<1x8x32xf32>
    tpu.vector_store %arg14[%c0_84, %c0_85, %c0_86], %98 {strides = array<i32>} : memref<3x8x32xf32, #tpu.memory_space<vmem>>, vector<1x8x32xf32>,
    %c1_87 = arith.constant 1 : index
    %c0_88 = arith.constant 0 : index
    %c0_89 = arith.constant 0 : index
    %99 = vector.load %arg13[%c1_87, %c0_88, %c0_89] : memref<3x32x32xf32, #tpu.memory_space<vmem>>, vector<1x32x32xf32>
    %100 = vector.shape_cast %99 : vector<1x32x32xf32> to vector<32x32xf32>
    %101 = arith.addf %100, %76 : vector<32x32xf32>
    %cst_90 = arith.constant 0.000000e+00 : f32
    %102 = vector.broadcast %cst_90 : f32 to vector<32x32xf32>
    %103 = arith.maximumf %101, %102 : vector<32x32xf32>
    %c0_91 = arith.constant 0 : index
    %c0_92 = arith.constant 0 : index
    %104 = vector.load %arg8[%c0_91, %c0_92] : memref<32x32xbf16, #tpu.memory_space<vmem>>, vector<32x32xbf16>
    %105 = arith.truncf %103 : vector<32x32xf32> to vector<32x32xbf16>
    %cst_93 = arith.constant dense<0.000000e+00> : vector<32x32xf32>
    %106 = tpu.matmul %104, %105, %cst_93 {dimension_numbers = #tpu.dot_dimension_numbers<[1], [0], [0], [1], [0, 0, 1, 1], [], []>} : vector<32x32xbf16>, vector<32x32xbf16>, vector<32x32xf32> -> vector<32x32xf32>
    %c0_94 = arith.constant 0 : index
    %c0_95 = arith.constant 0 : index
    %107 = vector.load %arg9[%c0_94, %c0_95] : memref<32x1xf32, #tpu.memory_space<vmem>>, vector<32x1xf32>
    %108 = vector.broadcast %107 : vector<32x1xf32> to vector<32x32xf32>
    %109 = arith.addf %106, %108 : vector<32x32xf32>
    %cst_96 = arith.constant 0.000000e+00 : f32
    %110 = vector.broadcast %cst_96 : f32 to vector<32x32xf32>
    %111 = arith.maximumf %109, %110 : vector<32x32xf32>
    %c0_97 = arith.constant 0 : index
    %c0_98 = arith.constant 0 : index
    %112 = vector.load %arg10[%c0_97, %c0_98] : memref<8x32xbf16, #tpu.memory_space<vmem>>, vector<8x32xbf16>
    %113 = arith.truncf %111 : vector<32x32xf32> to vector<32x32xbf16>
    %cst_99 = arith.constant dense<0.000000e+00> : vector<8x32xf32>
    %114 = tpu.matmul %112, %113, %cst_99 {dimension_numbers = #tpu.dot_dimension_numbers<[1], [0], [0], [1], [0, 0, 1, 1], [], []>} : vector<8x32xbf16>, vector<32x32xbf16>, vector<8x32xf32> -> vector<8x32xf32>
    %c1_100 = arith.constant 1 : index
    %c0_101 = arith.constant 0 : index
    %c0_102 = arith.constant 0 : index
    %115 = vector.load %arg14[%c1_100, %c0_101, %c0_102] : memref<3x8x32xf32, #tpu.memory_space<vmem>>, vector<1x8x32xf32>
    %116 = vector.shape_cast %115 : vector<1x8x32xf32> to vector<8x32xf32>
    %117 = arith.maximumf %116, %114 : vector<8x32xf32>
    %c1_103 = arith.constant 1 : index
    %c0_104 = arith.constant 0 : index
    %c0_105 = arith.constant 0 : index
    %118 = vector.load %arg14[%c1_103, %c0_104, %c0_105] : memref<3x8x32xf32, #tpu.memory_space<vmem>>, vector<1x8x32xf32>
    %119 = vector.shape_cast %118 : vector<1x8x32xf32> to vector<8x32xf32>
    %120 = vector.shape_cast %117 : vector<8x32xf32> to vector<1x8x32xf32>
    tpu.vector_store %arg14[%c1_103, %c0_104, %c0_105], %120 {strides = array<i32>} : memref<3x8x32xf32, #tpu.memory_space<vmem>>, vector<1x8x32xf32>,
    %c2_106 = arith.constant 2 : index
    %c0_107 = arith.constant 0 : index
    %c0_108 = arith.constant 0 : index
    %121 = vector.load %arg13[%c2_106, %c0_107, %c0_108] : memref<3x32x32xf32, #tpu.memory_space<vmem>>, vector<1x32x32xf32>
    %122 = vector.shape_cast %121 : vector<1x32x32xf32> to vector<32x32xf32>
    %123 = arith.addf %122, %76 : vector<32x32xf32>
    %cst_109 = arith.constant 0.000000e+00 : f32
    %124 = vector.broadcast %cst_109 : f32 to vector<32x32xf32>
    %125 = arith.maximumf %123, %124 : vector<32x32xf32>
    %c0_110 = arith.constant 0 : index
    %c0_111 = arith.constant 0 : index
    %126 = vector.load %arg8[%c0_110, %c0_111] : memref<32x32xbf16, #tpu.memory_space<vmem>>, vector<32x32xbf16>
    %127 = arith.truncf %125 : vector<32x32xf32> to vector<32x32xbf16>
    %cst_112 = arith.constant dense<0.000000e+00> : vector<32x32xf32>
    %128 = tpu.matmul %126, %127, %cst_112 {dimension_numbers = #tpu.dot_dimension_numbers<[1], [0], [0], [1], [0, 0, 1, 1], [], []>} : vector<32x32xbf16>, vector<32x32xbf16>, vector<32x32xf32> -> vector<32x32xf32>
    %c0_113 = arith.constant 0 : index
    %c0_114 = arith.constant 0 : index
    %129 = vector.load %arg9[%c0_113, %c0_114] : memref<32x1xf32, #tpu.memory_space<vmem>>, vector<32x1xf32>
    %130 = vector.broadcast %129 : vector<32x1xf32> to vector<32x32xf32>
    %131 = arith.addf %128, %130 : vector<32x32xf32>
    %cst_115 = arith.constant 0.000000e+00 : f32
    %132 = vector.broadcast %cst_115 : f32 to vector<32x32xf32>
    %133 = arith.maximumf %131, %132 : vector<32x32xf32>
    %c0_116 = arith.constant 0 : index
    %c0_117 = arith.constant 0 : index
    %134 = vector.load %arg10[%c0_116, %c0_117] : memref<8x32xbf16, #tpu.memory_space<vmem>>, vector<8x32xbf16>
    %135 = arith.truncf %133 : vector<32x32xf32> to vector<32x32xbf16>
    %cst_118 = arith.constant dense<0.000000e+00> : vector<8x32xf32>
    %136 = tpu.matmul %134, %135, %cst_118 {dimension_numbers = #tpu.dot_dimension_numbers<[1], [0], [0], [1], [0, 0, 1, 1], [], []>} : vector<8x32xbf16>, vector<32x32xbf16>, vector<8x32xf32> -> vector<8x32xf32>
    %c2_119 = arith.constant 2 : index
    %c0_120 = arith.constant 0 : index
    %c0_121 = arith.constant 0 : index
    %137 = vector.load %arg14[%c2_119, %c0_120, %c0_121] : memref<3x8x32xf32, #tpu.memory_space<vmem>>, vector<1x8x32xf32>
    %138 = vector.shape_cast %137 : vector<1x8x32xf32> to vector<8x32xf32>
    %139 = arith.maximumf %138, %136 : vector<8x32xf32>
    %c2_122 = arith.constant 2 : index
    %c0_123 = arith.constant 0 : index
    %c0_124 = arith.constant 0 : index
    %140 = vector.load %arg14[%c2_122, %c0_123, %c0_124] : memref<3x8x32xf32, #tpu.memory_space<vmem>>, vector<1x8x32xf32>
    %141 = vector.shape_cast %140 : vector<1x8x32xf32> to vector<8x32xf32>
    %142 = vector.shape_cast %139 : vector<8x32xf32> to vector<1x8x32xf32>
    tpu.vector_store %arg14[%c2_122, %c0_123, %c0_124], %142 {strides = array<i32>} : memref<3x8x32xf32, #tpu.memory_space<vmem>>, vector<1x8x32xf32>,
    %c0_125 = arith.constant 0 : index
    %c2_126 = arith.constant 2 : index
    %c0_127 = arith.constant 0 : index
    %c0_128 = arith.constant 0 : index
    %143 = vector.load %arg4[%c0_125, %c2_126, %c0_127, %c0_128] : memref<1x4x8x32xbf16, #tpu.memory_space<vmem>>, vector<1x1x8x32xbf16>
    %144 = vector.shape_cast %143 : vector<1x1x8x32xbf16> to vector<8x32xbf16>
    %c0_129 = arith.constant 0 : index
    %c0_130 = arith.constant 0 : index
    %145 = vector.load %arg6[%c0_129, %c0_130] : memref<32x8xbf16, #tpu.memory_space<vmem>>, vector<32x8xbf16>
    %cst_131 = arith.constant dense<0.000000e+00> : vector<32x32xf32>
    %146 = tpu.matmul %145, %144, %cst_131 {dimension_numbers = #tpu.dot_dimension_numbers<[1], [0], [0], [1], [0, 0, 1, 1], [], []>} : vector<32x8xbf16>, vector<8x32xbf16>, vector<32x32xf32> -> vector<32x32xf32>
    %c0_132 = arith.constant 0 : index
    %c0_133 = arith.constant 0 : index
    %c0_134 = arith.constant 0 : index
    %147 = vector.load %arg13[%c0_132, %c0_133, %c0_134] : memref<3x32x32xf32, #tpu.memory_space<vmem>>, vector<1x32x32xf32>
    %148 = vector.shape_cast %147 : vector<1x32x32xf32> to vector<32x32xf32>
    %149 = arith.addf %148, %146 : vector<32x32xf32>
    %cst_135 = arith.constant 0.000000e+00 : f32
    %150 = vector.broadcast %cst_135 : f32 to vector<32x32xf32>
    %151 = arith.maximumf %149, %150 : vector<32x32xf32>
    %c0_136 = arith.constant 0 : index
    %c0_137 = arith.constant 0 : index
    %152 = vector.load %arg8[%c0_136, %c0_137] : memref<32x32xbf16, #tpu.memory_space<vmem>>, vector<32x32xbf16>
    %153 = arith.truncf %151 : vector<32x32xf32> to vector<32x32xbf16>
    %cst_138 = arith.constant dense<0.000000e+00> : vector<32x32xf32>
    %154 = tpu.matmul %152, %153, %cst_138 {dimension_numbers = #tpu.dot_dimension_numbers<[1], [0], [0], [1], [0, 0, 1, 1], [], []>} : vector<32x32xbf16>, vector<32x32xbf16>, vector<32x32xf32> -> vector<32x32xf32>
    %c0_139 = arith.constant 0 : index
    %c0_140 = arith.constant 0 : index
    %155 = vector.load %arg9[%c0_139, %c0_140] : memref<32x1xf32, #tpu.memory_space<vmem>>, vector<32x1xf32>
    %156 = vector.broadcast %155 : vector<32x1xf32> to vector<32x32xf32>
    %157 = arith.addf %154, %156 : vector<32x32xf32>
    %cst_141 = arith.constant 0.000000e+00 : f32
    %158 = vector.broadcast %cst_141 : f32 to vector<32x32xf32>
    %159 = arith.maximumf %157, %158 : vector<32x32xf32>
    %c0_142 = arith.constant 0 : index
    %c0_143 = arith.constant 0 : index
    %160 = vector.load %arg10[%c0_142, %c0_143] : memref<8x32xbf16, #tpu.memory_space<vmem>>, vector<8x32xbf16>
    %161 = arith.truncf %159 : vector<32x32xf32> to vector<32x32xbf16>
    %cst_144 = arith.constant dense<0.000000e+00> : vector<8x32xf32>
    %162 = tpu.matmul %160, %161, %cst_144 {dimension_numbers = #tpu.dot_dimension_numbers<[1], [0], [0], [1], [0, 0, 1, 1], [], []>} : vector<8x32xbf16>, vector<32x32xbf16>, vector<8x32xf32> -> vector<8x32xf32>
    %c0_145 = arith.constant 0 : index
    %c0_146 = arith.constant 0 : index
    %c0_147 = arith.constant 0 : index
    %163 = vector.load %arg14[%c0_145, %c0_146, %c0_147] : memref<3x8x32xf32, #tpu.memory_space<vmem>>, vector<1x8x32xf32>
    %164 = vector.shape_cast %163 : vector<1x8x32xf32> to vector<8x32xf32>
    %165 = arith.maximumf %164, %162 : vector<8x32xf32>
    %c0_148 = arith.constant 0 : index
    %c0_149 = arith.constant 0 : index
    %c0_150 = arith.constant 0 : index
    %166 = vector.load %arg14[%c0_148, %c0_149, %c0_150] : memref<3x8x32xf32, #tpu.memory_space<vmem>>, vector<1x8x32xf32>
    %167 = vector.shape_cast %166 : vector<1x8x32xf32> to vector<8x32xf32>
    %168 = vector.shape_cast %165 : vector<8x32xf32> to vector<1x8x32xf32>
    tpu.vector_store %arg14[%c0_148, %c0_149, %c0_150], %168 {strides = array<i32>} : memref<3x8x32xf32, #tpu.memory_space<vmem>>, vector<1x8x32xf32>,
    %c1_151 = arith.constant 1 : index
    %c0_152 = arith.constant 0 : index
    %c0_153 = arith.constant 0 : index
    %169 = vector.load %arg13[%c1_151, %c0_152, %c0_153] : memref<3x32x32xf32, #tpu.memory_space<vmem>>, vector<1x32x32xf32>
    %170 = vector.shape_cast %169 : vector<1x32x32xf32> to vector<32x32xf32>
    %171 = arith.addf %170, %146 : vector<32x32xf32>
    %cst_154 = arith.constant 0.000000e+00 : f32
    %172 = vector.broadcast %cst_154 : f32 to vector<32x32xf32>
    %173 = arith.maximumf %171, %172 : vector<32x32xf32>
    %c0_155 = arith.constant 0 : index
    %c0_156 = arith.constant 0 : index
    %174 = vector.load %arg8[%c0_155, %c0_156] : memref<32x32xbf16, #tpu.memory_space<vmem>>, vector<32x32xbf16>
    %175 = arith.truncf %173 : vector<32x32xf32> to vector<32x32xbf16>
    %cst_157 = arith.constant dense<0.000000e+00> : vector<32x32xf32>
    %176 = tpu.matmul %174, %175, %cst_157 {dimension_numbers = #tpu.dot_dimension_numbers<[1], [0], [0], [1], [0, 0, 1, 1], [], []>} : vector<32x32xbf16>, vector<32x32xbf16>, vector<32x32xf32> -> vector<32x32xf32>
    %c0_158 = arith.constant 0 : index
    %c0_159 = arith.constant 0 : index
    %177 = vector.load %arg9[%c0_158, %c0_159] : memref<32x1xf32, #tpu.memory_space<vmem>>, vector<32x1xf32>
    %178 = vector.broadcast %177 : vector<32x1xf32> to vector<32x32xf32>
    %179 = arith.addf %176, %178 : vector<32x32xf32>
    %cst_160 = arith.constant 0.000000e+00 : f32
    %180 = vector.broadcast %cst_160 : f32 to vector<32x32xf32>
    %181 = arith.maximumf %179, %180 : vector<32x32xf32>
    %c0_161 = arith.constant 0 : index
    %c0_162 = arith.constant 0 : index
    %182 = vector.load %arg10[%c0_161, %c0_162] : memref<8x32xbf16, #tpu.memory_space<vmem>>, vector<8x32xbf16>
    %183 = arith.truncf %181 : vector<32x32xf32> to vector<32x32xbf16>
    %cst_163 = arith.constant dense<0.000000e+00> : vector<8x32xf32>
    %184 = tpu.matmul %182, %183, %cst_163 {dimension_numbers = #tpu.dot_dimension_numbers<[1], [0], [0], [1], [0, 0, 1, 1], [], []>} : vector<8x32xbf16>, vector<32x32xbf16>, vector<8x32xf32> -> vector<8x32xf32>
    %c1_164 = arith.constant 1 : index
    %c0_165 = arith.constant 0 : index
    %c0_166 = arith.constant 0 : index
    %185 = vector.load %arg14[%c1_164, %c0_165, %c0_166] : memref<3x8x32xf32, #tpu.memory_space<vmem>>, vector<1x8x32xf32>
    %186 = vector.shape_cast %185 : vector<1x8x32xf32> to vector<8x32xf32>
    %187 = arith.maximumf %186, %184 : vector<8x32xf32>
    %c1_167 = arith.constant 1 : index
    %c0_168 = arith.constant 0 : index
    %c0_169 = arith.constant 0 : index
    %188 = vector.load %arg14[%c1_167, %c0_168, %c0_169] : memref<3x8x32xf32, #tpu.memory_space<vmem>>, vector<1x8x32xf32>
    %189 = vector.shape_cast %188 : vector<1x8x32xf32> to vector<8x32xf32>
    %190 = vector.shape_cast %187 : vector<8x32xf32> to vector<1x8x32xf32>
    tpu.vector_store %arg14[%c1_167, %c0_168, %c0_169], %190 {strides = array<i32>} : memref<3x8x32xf32, #tpu.memory_space<vmem>>, vector<1x8x32xf32>,
    %c2_170 = arith.constant 2 : index
    %c0_171 = arith.constant 0 : index
    %c0_172 = arith.constant 0 : index
    %191 = vector.load %arg13[%c2_170, %c0_171, %c0_172] : memref<3x32x32xf32, #tpu.memory_space<vmem>>, vector<1x32x32xf32>
    %192 = vector.shape_cast %191 : vector<1x32x32xf32> to vector<32x32xf32>
    %193 = arith.addf %192, %146 : vector<32x32xf32>
    %cst_173 = arith.constant 0.000000e+00 : f32
    %194 = vector.broadcast %cst_173 : f32 to vector<32x32xf32>
    %195 = arith.maximumf %193, %194 : vector<32x32xf32>
    %c0_174 = arith.constant 0 : index
    %c0_175 = arith.constant 0 : index
    %196 = vector.load %arg8[%c0_174, %c0_175] : memref<32x32xbf16, #tpu.memory_space<vmem>>, vector<32x32xbf16>
    %197 = arith.truncf %195 : vector<32x32xf32> to vector<32x32xbf16>
    %cst_176 = arith.constant dense<0.000000e+00> : vector<32x32xf32>
    %198 = tpu.matmul %196, %197, %cst_176 {dimension_numbers = #tpu.dot_dimension_numbers<[1], [0], [0], [1], [0, 0, 1, 1], [], []>} : vector<32x32xbf16>, vector<32x32xbf16>, vector<32x32xf32> -> vector<32x32xf32>
    %c0_177 = arith.constant 0 : index
    %c0_178 = arith.constant 0 : index
    %199 = vector.load %arg9[%c0_177, %c0_178] : memref<32x1xf32, #tpu.memory_space<vmem>>, vector<32x1xf32>
    %200 = vector.broadcast %199 : vector<32x1xf32> to vector<32x32xf32>
    %201 = arith.addf %198, %200 : vector<32x32xf32>
    %cst_179 = arith.constant 0.000000e+00 : f32
    %202 = vector.broadcast %cst_179 : f32 to vector<32x32xf32>
    %203 = arith.maximumf %201, %202 : vector<32x32xf32>
    %c0_180 = arith.constant 0 : index
    %c0_181 = arith.constant 0 : index
    %204 = vector.load %arg10[%c0_180, %c0_181] : memref<8x32xbf16, #tpu.memory_space<vmem>>, vector<8x32xbf16>
    %205 = arith.truncf %203 : vector<32x32xf32> to vector<32x32xbf16>
    %cst_182 = arith.constant dense<0.000000e+00> : vector<8x32xf32>
    %206 = tpu.matmul %204, %205, %cst_182 {dimension_numbers = #tpu.dot_dimension_numbers<[1], [0], [0], [1], [0, 0, 1, 1], [], []>} : vector<8x32xbf16>, vector<32x32xbf16>, vector<8x32xf32> -> vector<8x32xf32>
    %c2_183 = arith.constant 2 : index
    %c0_184 = arith.constant 0 : index
    %c0_185 = arith.constant 0 : index
    %207 = vector.load %arg14[%c2_183, %c0_184, %c0_185] : memref<3x8x32xf32, #tpu.memory_space<vmem>>, vector<1x8x32xf32>
    %208 = vector.shape_cast %207 : vector<1x8x32xf32> to vector<8x32xf32>
    %209 = arith.maximumf %208, %206 : vector<8x32xf32>
    %c2_186 = arith.constant 2 : index
    %c0_187 = arith.constant 0 : index
    %c0_188 = arith.constant 0 : index
    %210 = vector.load %arg14[%c2_186, %c0_187, %c0_188] : memref<3x8x32xf32, #tpu.memory_space<vmem>>, vector<1x8x32xf32>
    %211 = vector.shape_cast %210 : vector<1x8x32xf32> to vector<8x32xf32>
    %212 = vector.shape_cast %209 : vector<8x32xf32> to vector<1x8x32xf32>
    tpu.vector_store %arg14[%c2_186, %c0_187, %c0_188], %212 {strides = array<i32>} : memref<3x8x32xf32, #tpu.memory_space<vmem>>, vector<1x8x32xf32>,
    %c0_189 = arith.constant 0 : index
    %c3 = arith.constant 3 : index
    %c0_190 = arith.constant 0 : index
    %c0_191 = arith.constant 0 : index
    %213 = vector.load %arg4[%c0_189, %c3, %c0_190, %c0_191] : memref<1x4x8x32xbf16, #tpu.memory_space<vmem>>, vector<1x1x8x32xbf16>
    %214 = vector.shape_cast %213 : vector<1x1x8x32xbf16> to vector<8x32xbf16>
    %c0_192 = arith.constant 0 : index
    %c0_193 = arith.constant 0 : index
    %215 = vector.load %arg6[%c0_192, %c0_193] : memref<32x8xbf16, #tpu.memory_space<vmem>>, vector<32x8xbf16>
    %cst_194 = arith.constant dense<0.000000e+00> : vector<32x32xf32>
    %216 = tpu.matmul %215, %214, %cst_194 {dimension_numbers = #tpu.dot_dimension_numbers<[1], [0], [0], [1], [0, 0, 1, 1], [], []>} : vector<32x8xbf16>, vector<8x32xbf16>, vector<32x32xf32> -> vector<32x32xf32>
    %c0_195 = arith.constant 0 : index
    %c0_196 = arith.constant 0 : index
    %c0_197 = arith.constant 0 : index
    %217 = vector.load %arg13[%c0_195, %c0_196, %c0_197] : memref<3x32x32xf32, #tpu.memory_space<vmem>>, vector<1x32x32xf32>
    %218 = vector.shape_cast %217 : vector<1x32x32xf32> to vector<32x32xf32>
    %219 = arith.addf %218, %216 : vector<32x32xf32>
    %cst_198 = arith.constant 0.000000e+00 : f32
    %220 = vector.broadcast %cst_198 : f32 to vector<32x32xf32>
    %221 = arith.maximumf %219, %220 : vector<32x32xf32>
    %c0_199 = arith.constant 0 : index
    %c0_200 = arith.constant 0 : index
    %222 = vector.load %arg8[%c0_199, %c0_200] : memref<32x32xbf16, #tpu.memory_space<vmem>>, vector<32x32xbf16>
    %223 = arith.truncf %221 : vector<32x32xf32> to vector<32x32xbf16>
    %cst_201 = arith.constant dense<0.000000e+00> : vector<32x32xf32>
    %224 = tpu.matmul %222, %223, %cst_201 {dimension_numbers = #tpu.dot_dimension_numbers<[1], [0], [0], [1], [0, 0, 1, 1], [], []>} : vector<32x32xbf16>, vector<32x32xbf16>, vector<32x32xf32> -> vector<32x32xf32>
    %c0_202 = arith.constant 0 : index
    %c0_203 = arith.constant 0 : index
    %225 = vector.load %arg9[%c0_202, %c0_203] : memref<32x1xf32, #tpu.memory_space<vmem>>, vector<32x1xf32>
    %226 = vector.broadcast %225 : vector<32x1xf32> to vector<32x32xf32>
    %227 = arith.addf %224, %226 : vector<32x32xf32>
    %cst_204 = arith.constant 0.000000e+00 : f32
    %228 = vector.broadcast %cst_204 : f32 to vector<32x32xf32>
    %229 = arith.maximumf %227, %228 : vector<32x32xf32>
    %c0_205 = arith.constant 0 : index
    %c0_206 = arith.constant 0 : index
    %230 = vector.load %arg10[%c0_205, %c0_206] : memref<8x32xbf16, #tpu.memory_space<vmem>>, vector<8x32xbf16>
    %231 = arith.truncf %229 : vector<32x32xf32> to vector<32x32xbf16>
    %cst_207 = arith.constant dense<0.000000e+00> : vector<8x32xf32>
    %232 = tpu.matmul %230, %231, %cst_207 {dimension_numbers = #tpu.dot_dimension_numbers<[1], [0], [0], [1], [0, 0, 1, 1], [], []>} : vector<8x32xbf16>, vector<32x32xbf16>, vector<8x32xf32> -> vector<8x32xf32>
    %c0_208 = arith.constant 0 : index
    %c0_209 = arith.constant 0 : index
    %c0_210 = arith.constant 0 : index
    %233 = vector.load %arg14[%c0_208, %c0_209, %c0_210] : memref<3x8x32xf32, #tpu.memory_space<vmem>>, vector<1x8x32xf32>
    %234 = vector.shape_cast %233 : vector<1x8x32xf32> to vector<8x32xf32>
    %235 = arith.maximumf %234, %232 : vector<8x32xf32>
    %c0_211 = arith.constant 0 : index
    %c0_212 = arith.constant 0 : index
    %c0_213 = arith.constant 0 : index
    %236 = vector.load %arg14[%c0_211, %c0_212, %c0_213] : memref<3x8x32xf32, #tpu.memory_space<vmem>>, vector<1x8x32xf32>
    %237 = vector.shape_cast %236 : vector<1x8x32xf32> to vector<8x32xf32>
    %238 = vector.shape_cast %235 : vector<8x32xf32> to vector<1x8x32xf32>
    tpu.vector_store %arg14[%c0_211, %c0_212, %c0_213], %238 {strides = array<i32>} : memref<3x8x32xf32, #tpu.memory_space<vmem>>, vector<1x8x32xf32>,
    %c1_214 = arith.constant 1 : index
    %c0_215 = arith.constant 0 : index
    %c0_216 = arith.constant 0 : index
    %239 = vector.load %arg13[%c1_214, %c0_215, %c0_216] : memref<3x32x32xf32, #tpu.memory_space<vmem>>, vector<1x32x32xf32>
    %240 = vector.shape_cast %239 : vector<1x32x32xf32> to vector<32x32xf32>
    %241 = arith.addf %240, %216 : vector<32x32xf32>
    %cst_217 = arith.constant 0.000000e+00 : f32
    %242 = vector.broadcast %cst_217 : f32 to vector<32x32xf32>
    %243 = arith.maximumf %241, %242 : vector<32x32xf32>
    %c0_218 = arith.constant 0 : index
    %c0_219 = arith.constant 0 : index
    %244 = vector.load %arg8[%c0_218, %c0_219] : memref<32x32xbf16, #tpu.memory_space<vmem>>, vector<32x32xbf16>
    %245 = arith.truncf %243 : vector<32x32xf32> to vector<32x32xbf16>
    %cst_220 = arith.constant dense<0.000000e+00> : vector<32x32xf32>
    %246 = tpu.matmul %244, %245, %cst_220 {dimension_numbers = #tpu.dot_dimension_numbers<[1], [0], [0], [1], [0, 0, 1, 1], [], []>} : vector<32x32xbf16>, vector<32x32xbf16>, vector<32x32xf32> -> vector<32x32xf32>
    %c0_221 = arith.constant 0 : index
    %c0_222 = arith.constant 0 : index
    %247 = vector.load %arg9[%c0_221, %c0_222] : memref<32x1xf32, #tpu.memory_space<vmem>>, vector<32x1xf32>
    %248 = vector.broadcast %247 : vector<32x1xf32> to vector<32x32xf32>
    %249 = arith.addf %246, %248 : vector<32x32xf32>
    %cst_223 = arith.constant 0.000000e+00 : f32
    %250 = vector.broadcast %cst_223 : f32 to vector<32x32xf32>
    %251 = arith.maximumf %249, %250 : vector<32x32xf32>
    %c0_224 = arith.constant 0 : index
    %c0_225 = arith.constant 0 : index
    %252 = vector.load %arg10[%c0_224, %c0_225] : memref<8x32xbf16, #tpu.memory_space<vmem>>, vector<8x32xbf16>
    %253 = arith.truncf %251 : vector<32x32xf32> to vector<32x32xbf16>
    %cst_226 = arith.constant dense<0.000000e+00> : vector<8x32xf32>
    %254 = tpu.matmul %252, %253, %cst_226 {dimension_numbers = #tpu.dot_dimension_numbers<[1], [0], [0], [1], [0, 0, 1, 1], [], []>} : vector<8x32xbf16>, vector<32x32xbf16>, vector<8x32xf32> -> vector<8x32xf32>
    %c1_227 = arith.constant 1 : index
    %c0_228 = arith.constant 0 : index
    %c0_229 = arith.constant 0 : index
    %255 = vector.load %arg14[%c1_227, %c0_228, %c0_229] : memref<3x8x32xf32, #tpu.memory_space<vmem>>, vector<1x8x32xf32>
    %256 = vector.shape_cast %255 : vector<1x8x32xf32> to vector<8x32xf32>
    %257 = arith.maximumf %256, %254 : vector<8x32xf32>
    %c1_230 = arith.constant 1 : index
    %c0_231 = arith.constant 0 : index
    %c0_232 = arith.constant 0 : index
    %258 = vector.load %arg14[%c1_230, %c0_231, %c0_232] : memref<3x8x32xf32, #tpu.memory_space<vmem>>, vector<1x8x32xf32>
    %259 = vector.shape_cast %258 : vector<1x8x32xf32> to vector<8x32xf32>
    %260 = vector.shape_cast %257 : vector<8x32xf32> to vector<1x8x32xf32>
    tpu.vector_store %arg14[%c1_230, %c0_231, %c0_232], %260 {strides = array<i32>} : memref<3x8x32xf32, #tpu.memory_space<vmem>>, vector<1x8x32xf32>,
    %c2_233 = arith.constant 2 : index
    %c0_234 = arith.constant 0 : index
    %c0_235 = arith.constant 0 : index
    %261 = vector.load %arg13[%c2_233, %c0_234, %c0_235] : memref<3x32x32xf32, #tpu.memory_space<vmem>>, vector<1x32x32xf32>
    %262 = vector.shape_cast %261 : vector<1x32x32xf32> to vector<32x32xf32>
    %263 = arith.addf %262, %216 : vector<32x32xf32>
    %cst_236 = arith.constant 0.000000e+00 : f32
    %264 = vector.broadcast %cst_236 : f32 to vector<32x32xf32>
    %265 = arith.maximumf %263, %264 : vector<32x32xf32>
    %c0_237 = arith.constant 0 : index
    %c0_238 = arith.constant 0 : index
    %266 = vector.load %arg8[%c0_237, %c0_238] : memref<32x32xbf16, #tpu.memory_space<vmem>>, vector<32x32xbf16>
    %267 = arith.truncf %265 : vector<32x32xf32> to vector<32x32xbf16>
    %cst_239 = arith.constant dense<0.000000e+00> : vector<32x32xf32>
    %268 = tpu.matmul %266, %267, %cst_239 {dimension_numbers = #tpu.dot_dimension_numbers<[1], [0], [0], [1], [0, 0, 1, 1], [], []>} : vector<32x32xbf16>, vector<32x32xbf16>, vector<32x32xf32> -> vector<32x32xf32>
    %c0_240 = arith.constant 0 : index
    %c0_241 = arith.constant 0 : index
    %269 = vector.load %arg9[%c0_240, %c0_241] : memref<32x1xf32, #tpu.memory_space<vmem>>, vector<32x1xf32>
    %270 = vector.broadcast %269 : vector<32x1xf32> to vector<32x32xf32>
    %271 = arith.addf %268, %270 : vector<32x32xf32>
    %cst_242 = arith.constant 0.000000e+00 : f32
    %272 = vector.broadcast %cst_242 : f32 to vector<32x32xf32>
    %273 = arith.maximumf %271, %272 : vector<32x32xf32>
    %c0_243 = arith.constant 0 : index
    %c0_244 = arith.constant 0 : index
    %274 = vector.load %arg10[%c0_243, %c0_244] : memref<8x32xbf16, #tpu.memory_space<vmem>>, vector<8x32xbf16>
    %275 = arith.truncf %273 : vector<32x32xf32> to vector<32x32xbf16>
    %cst_245 = arith.constant dense<0.000000e+00> : vector<8x32xf32>
    %276 = tpu.matmul %274, %275, %cst_245 {dimension_numbers = #tpu.dot_dimension_numbers<[1], [0], [0], [1], [0, 0, 1, 1], [], []>} : vector<8x32xbf16>, vector<32x32xbf16>, vector<8x32xf32> -> vector<8x32xf32>
    %c2_246 = arith.constant 2 : index
    %c0_247 = arith.constant 0 : index
    %c0_248 = arith.constant 0 : index
    %277 = vector.load %arg14[%c2_246, %c0_247, %c0_248] : memref<3x8x32xf32, #tpu.memory_space<vmem>>, vector<1x8x32xf32>
    %278 = vector.shape_cast %277 : vector<1x8x32xf32> to vector<8x32xf32>
    %279 = arith.maximumf %278, %276 : vector<8x32xf32>
    %c2_249 = arith.constant 2 : index
    %c0_250 = arith.constant 0 : index
    %c0_251 = arith.constant 0 : index
    %280 = vector.load %arg14[%c2_249, %c0_250, %c0_251] : memref<3x8x32xf32, #tpu.memory_space<vmem>>, vector<1x8x32xf32>
    %281 = vector.shape_cast %280 : vector<1x8x32xf32> to vector<8x32xf32>
    %282 = vector.shape_cast %279 : vector<8x32xf32> to vector<1x8x32xf32>
    tpu.vector_store %arg14[%c2_249, %c0_250, %c0_251], %282 {strides = array<i32>} : memref<3x8x32xf32, #tpu.memory_space<vmem>>, vector<1x8x32xf32>,
    %c0_i32_252 = arith.constant 0 : i32
    %283 = arith.cmpi eq, %arg2, %c0_i32_252 : i32
    %284 = arith.extui %283 : i1 to i32
    %c0_i32_253 = arith.constant 0 : i32
    %285 = arith.cmpi ne, %284, %c0_i32_253 : i32
    scf.if %285 {
      %c0_254 = arith.constant 0 : index
      %c0_255 = arith.constant 0 : index
      %c0_256 = arith.constant 0 : index
      %286 = vector.load %arg14[%c0_254, %c0_255, %c0_256] : memref<3x8x32xf32, #tpu.memory_space<vmem>>, vector<1x8x32xf32>
      %287 = vector.shape_cast %286 : vector<1x8x32xf32> to vector<8x32xf32>
      %c0_257 = arith.constant 0 : index
      %c0_258 = arith.constant 0 : index
      %288 = vector.load %arg11[%c0_257, %c0_258] : memref<8x1xf32, #tpu.memory_space<vmem>>, vector<8x1xf32>
      %289 = vector.broadcast %288 : vector<8x1xf32> to vector<8x32xf32>
      %290 = arith.addf %287, %289 : vector<8x32xf32>
      %c0_259 = arith.constant 0 : index
      %c0_260 = arith.constant 0 : index
      %c0_261 = arith.constant 0 : index
      %c0_262 = arith.constant 0 : index
      %291 = vector.load %arg3[%c0_259, %c0_260, %c0_261, %c0_262] : memref<1x3x8x32xf32, #tpu.memory_space<vmem>>, vector<1x1x8x32xf32>
      %292 = vector.shape_cast %291 : vector<1x1x8x32xf32> to vector<8x32xf32>
      %293 = arith.addf %290, %292 : vector<8x32xf32>
      %c0_263 = arith.constant 0 : index
      %c0_264 = arith.constant 0 : index
      %c0_265 = arith.constant 0 : index
      %c0_266 = arith.constant 0 : index
      %294 = vector.load %arg12[%c0_263, %c0_264, %c0_265, %c0_266] : memref<1x3x8x32xf32, #tpu.memory_space<vmem>>, vector<1x1x8x32xf32>
      %295 = vector.shape_cast %294 : vector<1x1x8x32xf32> to vector<8x32xf32>
      %296 = vector.shape_cast %293 : vector<8x32xf32> to vector<1x1x8x32xf32>
      tpu.vector_store %arg12[%c0_263, %c0_264, %c0_265, %c0_266], %296 {strides = array<i32>} : memref<1x3x8x32xf32, #tpu.memory_space<vmem>>, vector<1x1x8x32xf32>,
      %c1_267 = arith.constant 1 : index
      %c0_268 = arith.constant 0 : index
      %c0_269 = arith.constant 0 : index
      %297 = vector.load %arg14[%c1_267, %c0_268, %c0_269] : memref<3x8x32xf32, #tpu.memory_space<vmem>>, vector<1x8x32xf32>
      %298 = vector.shape_cast %297 : vector<1x8x32xf32> to vector<8x32xf32>
      %c0_270 = arith.constant 0 : index
      %c0_271 = arith.constant 0 : index
      %299 = vector.load %arg11[%c0_270, %c0_271] : memref<8x1xf32, #tpu.memory_space<vmem>>, vector<8x1xf32>
      %300 = vector.broadcast %299 : vector<8x1xf32> to vector<8x32xf32>
      %301 = arith.addf %298, %300 : vector<8x32xf32>
      %c0_272 = arith.constant 0 : index
      %c1_273 = arith.constant 1 : index
      %c0_274 = arith.constant 0 : index
      %c0_275 = arith.constant 0 : index
      %302 = vector.load %arg3[%c0_272, %c1_273, %c0_274, %c0_275] : memref<1x3x8x32xf32, #tpu.memory_space<vmem>>, vector<1x1x8x32xf32>
      %303 = vector.shape_cast %302 : vector<1x1x8x32xf32> to vector<8x32xf32>
      %304 = arith.addf %301, %303 : vector<8x32xf32>
      %c0_276 = arith.constant 0 : index
      %c1_277 = arith.constant 1 : index
      %c0_278 = arith.constant 0 : index
      %c0_279 = arith.constant 0 : index
      %305 = vector.load %arg12[%c0_276, %c1_277, %c0_278, %c0_279] : memref<1x3x8x32xf32, #tpu.memory_space<vmem>>, vector<1x1x8x32xf32>
      %306 = vector.shape_cast %305 : vector<1x1x8x32xf32> to vector<8x32xf32>
      %307 = vector.shape_cast %304 : vector<8x32xf32> to vector<1x1x8x32xf32>
      tpu.vector_store %arg12[%c0_276, %c1_277, %c0_278, %c0_279], %307 {strides = array<i32>} : memref<1x3x8x32xf32, #tpu.memory_space<vmem>>, vector<1x1x8x32xf32>,
      %c2_280 = arith.constant 2 : index
      %c0_281 = arith.constant 0 : index
      %c0_282 = arith.constant 0 : index
      %308 = vector.load %arg14[%c2_280, %c0_281, %c0_282] : memref<3x8x32xf32, #tpu.memory_space<vmem>>, vector<1x8x32xf32>
      %309 = vector.shape_cast %308 : vector<1x8x32xf32> to vector<8x32xf32>
      %c0_283 = arith.constant 0 : index
      %c0_284 = arith.constant 0 : index
      %310 = vector.load %arg11[%c0_283, %c0_284] : memref<8x1xf32, #tpu.memory_space<vmem>>, vector<8x1xf32>
      %311 = vector.broadcast %310 : vector<8x1xf32> to vector<8x32xf32>
      %312 = arith.addf %309, %311 : vector<8x32xf32>
      %c0_285 = arith.constant 0 : index
      %c2_286 = arith.constant 2 : index
      %c0_287 = arith.constant 0 : index
      %c0_288 = arith.constant 0 : index
      %313 = vector.load %arg3[%c0_285, %c2_286, %c0_287, %c0_288] : memref<1x3x8x32xf32, #tpu.memory_space<vmem>>, vector<1x1x8x32xf32>
      %314 = vector.shape_cast %313 : vector<1x1x8x32xf32> to vector<8x32xf32>
      %315 = arith.addf %312, %314 : vector<8x32xf32>
      %c0_289 = arith.constant 0 : index
      %c2_290 = arith.constant 2 : index
      %c0_291 = arith.constant 0 : index
      %c0_292 = arith.constant 0 : index
      %316 = vector.load %arg12[%c0_289, %c2_290, %c0_291, %c0_292] : memref<1x3x8x32xf32, #tpu.memory_space<vmem>>, vector<1x1x8x32xf32>
      %317 = vector.shape_cast %316 : vector<1x1x8x32xf32> to vector<8x32xf32>
      %318 = vector.shape_cast %315 : vector<8x32xf32> to vector<1x1x8x32xf32>
      tpu.vector_store %arg12[%c0_289, %c2_290, %c0_291, %c0_292], %318 {strides = array<i32>} : memref<1x3x8x32xf32, #tpu.memory_space<vmem>>, vector<1x1x8x32xf32>,
    } else {
    }
    return
  }
  func.func @transform_0(%arg0: i32, %arg1: i32, %arg2: i32) -> (i32, i32, i32, i32) {
    %c0_i32 = arith.constant 0 : i32
    %c0_i32_0 = arith.constant 0 : i32
    %c0_i32_1 = arith.constant 0 : i32
    return %arg0, %c0_i32, %c0_i32_0, %arg1 : i32, i32, i32, i32
  }
  func.func @transform_1(%arg0: i32, %arg1: i32, %arg2: i32) -> (i32, i32, i32, i32) {
    %c0_i32 = arith.constant 0 : i32
    %c0_i32_0 = arith.constant 0 : i32
    return %arg0, %arg2, %c0_i32, %arg1 : i32, i32, i32, i32
  }
  func.func @transform_2(%arg0: i32, %arg1: i32, %arg2: i32) -> (i32, i32) {
    %c0_i32 = arith.constant 0 : i32
    %c0_i32_0 = arith.constant 0 : i32
    %c0_i32_1 = arith.constant 0 : i32
    return %c0_i32, %c0_i32_0 : i32, i32
  }
  func.func @transform_3(%arg0: i32, %arg1: i32, %arg2: i32) -> (i32, i32) {
    %c0_i32 = arith.constant 0 : i32
    %c0_i32_0 = arith.constant 0 : i32
    %c0_i32_1 = arith.constant 0 : i32
    return %c0_i32, %c0_i32_0 : i32, i32
  }
  func.func @transform_4(%arg0: i32, %arg1: i32, %arg2: i32) -> (i32, i32) {
    %c0_i32 = arith.constant 0 : i32
    %c0_i32_0 = arith.constant 0 : i32
    %c0_i32_1 = arith.constant 0 : i32
    return %c0_i32, %c0_i32_0 : i32, i32
  }
  func.func @transform_5(%arg0: i32, %arg1: i32, %arg2: i32) -> (i32, i32) {
    %c0_i32 = arith.constant 0 : i32
    %c0_i32_0 = arith.constant 0 : i32
    %c0_i32_1 = arith.constant 0 : i32
    return %c0_i32, %c0_i32_0 : i32, i32
  }
  func.func @transform_6(%arg0: i32, %arg1: i32, %arg2: i32) -> (i32, i32) {
    %c0_i32 = arith.constant 0 : i32
    %c0_i32_0 = arith.constant 0 : i32
    %c0_i32_1 = arith.constant 0 : i32
    return %c0_i32, %c0_i32_0 : i32, i32
  }
  func.func @transform_7(%arg0: i32, %arg1: i32, %arg2: i32) -> (i32, i32) {
    %c0_i32 = arith.constant 0 : i32
    %c0_i32_0 = arith.constant 0 : i32
    %c0_i32_1 = arith.constant 0 : i32
    return %c0_i32, %c0_i32_0 : i32, i32
  }
  func.func @transform_8(%arg0: i32, %arg1: i32, %arg2: i32) -> (i32, i32) {
    %c0_i32 = arith.constant 0 : i32
    %c0_i32_0 = arith.constant 0 : i32
    %c0_i32_1 = arith.constant 0 : i32
    return %c0_i32, %c0_i32_0 : i32, i32
  }
  func.func @transform_9(%arg0: i32, %arg1: i32, %arg2: i32) -> (i32, i32, i32, i32) {
    %c0_i32 = arith.constant 0 : i32
    %c0_i32_0 = arith.constant 0 : i32
    %c0_i32_1 = arith.constant 0 : i32
    return %arg0, %c0_i32, %c0_i32_0, %arg1 : i32, i32, i32, i32
  }
}

</mosaic_0001>

<bundles_post_ra>
// kernel: neg.1
= control target key start
LH: loop header
LB: loop body
LE: loop exit
PB: predicated region body
PF: predicated region fallthrough
CT: control target
= control target key end

     0   :  { %s136_s0 = inlined_call_operand.vmem [shape: f32[2,32,32], index: 0, kind: input, shape index: {}]   ;;  %s137_s1 = inlined_call_operand.vmem [shape: f32[2,32,32], index: 1, kind: output, shape index: {}]  }
   0x1   :  { %v2_v0 = vld [vmem:[%s136_s0] sm:$0xff]  ;;  %v66_v2 = vld [vmem:[%s136_s0 + $0x8] sm:$0xff]  ;;  %v70_v7 = vld [vmem:[%s136_s0 + $0x10] sm:$0xff] }
   0x2   :  { %v64_v1 = vld [vmem:[%s136_s0 + $0x20] sm:$0xff]  ;;  %v5_v3 = vxor.u32 2147483648, %v2_v0  ;;  %v20_v5 = vxor.u32 2147483648, %v66_v2  ;;  %v68_v6 = vld [vmem:[%s136_s0 + $0x28] sm:$0xff]  ;;  %v72_v8 = vld [vmem:[%s136_s0 + $0x30] sm:$0xff]  ;;  %v36_v11 = vxor.u32 2147483648, %v70_v7 }
   0x3   :  { %v12_v4 = vxor.u32 2147483648, %v64_v1  ;;  %v28_v9 = vxor.u32 2147483648, %v68_v6  ;;  %v74_v10 = vld [vmem:[%s136_s0 + $0x18] sm:$0xff]  ;;  %v44_v13 = vxor.u32 2147483648, %v72_v8 }
   0x4   :  { %7 = vst [vmem:[%s137_s1] sm:$0xff] %v5_v3  ;;  %v76_v12 = vld [vmem:[%s136_s0 + $0x38] sm:$0xff]  ;;  %v52_v14 = vxor.u32 2147483648, %v74_v10 }
   0x5   :  { %65 = vst [vmem:[%s137_s1 + $0x20] sm:$0xff] %v12_v4  ;;  %v60_v15 = vxor.u32 2147483648, %v76_v12 }
   0x6   :  { %67 = vst [vmem:[%s137_s1 + $0x8] sm:$0xff] %v20_v5 }
   0x7   :  { %69 = vst [vmem:[%s137_s1 + $0x28] sm:$0xff] %v28_v9 }
   0x8   :  { %71 = vst [vmem:[%s137_s1 + $0x10] sm:$0xff] %v36_v11 }
   0x9   :  { %73 = vst [vmem:[%s137_s1 + $0x30] sm:$0xff] %v44_v13 }
   0xa   :  { %75 = vst [vmem:[%s137_s1 + $0x18] sm:$0xff] %v52_v14 }
   0xb   :  { %77 = vst [vmem:[%s137_s1 + $0x38] sm:$0xff] %v60_v15 }

// kernel: resconv_forward.2
= control target key start
LH: loop header
LB: loop body
LE: loop exit
PB: predicated region body
PF: predicated region fallthrough
CT: control target
= control target key end

     0   :  { %s618_s9 = smov 0   ;;  %s620_s10 = smov 0   ;;  %s671_s0 = inlined_call_operand.vmem [shape: f32[2,8,32], index: 0, kind: input, shape index: {}, may-alias: {0,1}]   ;;  %s672_s1 = inlined_call_operand.vmem [shape: f32[2,8,32], index: 1, kind: input, shape index: {}, may-alias: {0,1}]   ;;  %s673_s2 = inlined_call_operand.vmem [shape: f32[2,32,32], index: 2, kind: output, shape index: {}]  }
   0x1   :  { %s622_s11 = smov 0  }
   0x2 LB: > { %s31_s12 = sadd.s32 1, %s595_s10  ;;  %p529_p0 = scmp.ge.s32.totalorder %s599_s11, 1  ;;  %s599_s11 = sphi %s622_s11, %s12_s11   ;;  %s595_s10 = sphi %s620_s10, %s675_s10   ;;  %s591_s9 = sphi %s618_s9, %s674_s9  }
   0x3   : > { %p33_p1 = scmp.ge.s32.totalorder %s31_s12, 2  ;;  %p153_p2 = scmp.lt.s32.totalorder %s599_s11, 3 }
   0x5   : > { %s677_s12 = smov (%p33_p1, %s31_s12), 0  ;;  %p154_p3 = pnand %p529_p0, %p153_p2 }
   0x6   : > { %p191_p4 = scmp.lt.s32.totalorder (!%p154_p3), %s591_s9, 1 }
   0x7   : > { %157 = sbr.rel (%p154_p3) target bundleno = 437 (0x1b5), region = 28 }
   0xc   : > { %s679_s9 = smov (!%p191_p4, %s591_s9), 1  ;;  %v601_v2 = vmov 1.0   ;;  %vm252_vm0 = vcmask 64512   ;;  %v602_v8 = vmov 0   ;;  %vm369_vm1 = vcmask 261120  }
   0xd   : > { %s530_s13 = sshll.u32 %s679_s9, 3  ;;  %354 = vmatpush.msra.mxu1 %v601_v2  ;;  %546 = vmatpush.msra.mxu3 %v601_v2  ;;  %s544_s20 = sshll.u32 %s679_s9, 5 }
   0xe   : > { %s197_s16 = scalar_lea.vmem %s671_s0, %s530_s13  ;;  %s204_s19 = scalar_lea.vmem %s672_s1, %s530_s13  ;;  %574 = vset.pattern.permute.xlu1 %v602_v8  ;;  %575 = vset.pattern.permute.xlu2 %v602_v8 }
   0xf   : > { %v218_v0 = vld [vmem:[%s197_s16] sm:$0xff]  ;;  %s216_s23 = scalar_lea.vmem %s673_s2, %s544_s20 }
  0x10   : > { %v294_v1 = vmul.f32 %v218_v0, %v218_v0  ;;  %v219_v4 = vld [vmem:[%s204_s19] sm:$0xff] }
  0x11   : > { %280 = vmatpush.msra.mxu0 %v219_v4  ;;  %545 = vmatpush.msra.mxu2 %v219_v4  ;;  %v368_v17 = vmul.f32 %v219_v4, %v219_v4 }
  0x12   : > { %295 = vxpose.xlu0.b32.start.end [1/1] (short) (narrow) %v294_v1, 32 }
  0x13   : > { %v370_v18 = vsel %vm369_vm1, %v368_v17, 0.0 }
  0x14   : > { %v371_v19 = vrot.slane %v370_v18, 4 }
  0x16   : > { %v372_v20 = vadd.f32 %v371_v19, %v370_v18 }
  0x18   : > { %v373_v21 = vrot.slane %v372_v20, 2 }
  0x1a   : > { %v374_v22 = vadd.f32 %v373_v21, %v372_v20 }
  0x1c   : > { %v375_v23 = vrot.slane %v374_v22, 1 }
  0x1e   : > { %v376_v25 = vadd.f32 %v375_v23, %v374_v22 }
  0x32   : > { %220 = vxpose.xlu0.b32.start.end [1/1] (short) (narrow) %v218_v0, 32 }
  0x99   : > { %576 = vset.pattern.permute.xlu0 %v602_v8 }
  0xb6   : > { %v311_v3 = vpop.trf.xlu0 }
  0xb7   : > { %538 = vmatmul.msk.f32.vlgmr.msra.gmra.mxu1 %vm252_vm0, %v311_v3 }
  0xbe   : > { %v312_v5 = vpop.trf.xlu0 }
  0xbf   : > { %539 = vmatmul.msk.f32.gmra.mxu1 %vm252_vm0, %v312_v5 }
  0xc6   : > { %v313_v6 = vpop.trf.xlu0 }
  0xc7   : > { %540 = vmatmul.msk.f32.vlgmr.msra.gmra.mxu3 %vm252_vm0, %v313_v6 }
  0xce   : > { %v314_v7 = vpop.trf.xlu0 }
  0xcf   : > { %541 = vmatmul.msk.f32.gmra.mxu3 %vm252_vm0, %v314_v7 }
  0xd6   : > { %v236_v9 = vpop.trf.xlu0 }
  0xd7   : > { %534 = vmatmul.msk.f32.vlgmr.msra.gmra.mxu0 %vm252_vm0, %v236_v9 }
  0xde   : > { %v237_v10 = vpop.trf.xlu0 }
  0xdf   : > { %535 = vmatmul.msk.f32.gmra.mxu0 %vm252_vm0, %v237_v10 }
  0xe6   : > { %v238_v11 = vpop.trf.xlu0 }
  0xe7   : > { %536 = vmatmul.msk.f32.vlgmr.msra.gmra.mxu2 %vm252_vm0, %v238_v11 }
  0xee   : > { %v239_v12 = vpop.trf.xlu0 }
  0xef   : > { %537 = vmatmul.msk.f32.gmra.mxu2 %vm252_vm0, %v239_v12 }
 0x134   : > { %v356_v13 = vpop.f32.mrf.mxu1 }
 0x135   : > { %379 = vperm.xlu1 %574, %v356_v13  }
 0x13c   : > { %v359_v14 = vpop.f32.mrf.mxu1 }
 0x13d   : > { %384 = vperm.xlu1 %574, %v359_v14  }
 0x14a   : > { %v362_v15 = vpop.f32.mrf.mxu3 }
 0x14b   : > { %389 = vperm.xlu2 %575, %v362_v15  }
 0x152   : > { %v365_v16 = vpop.f32.mrf.mxu3 }
 0x153   : > { %394 = vperm.xlu2 %575, %v365_v16  }
 0x154   : > { %v282_v26 = vpop.f32.mrf.mxu0 }
 0x155   : > { %v401_v31 = vmul.f32 2.0, %v282_v26 }
 0x15c   : > { %v285_v37 = vpop.f32.mrf.mxu0 }
 0x15d   : > { %v402_v41 = vmul.f32 2.0, %v285_v37 }
 0x16a   : > { %v288_v24 = vpop.f32.mrf.mxu2 }
 0x16b   : > { %v403_v27 = vmul.f32 2.0, %v288_v24 }
 0x172   : > { %v291_v34 = vpop.f32.mrf.mxu2 }
 0x173   : > { %v404_v36 = vmul.f32 2.0, %v291_v34 }
 0x1a5   : > { %v390_v28 = vpop.permute.xlu2 %389 }
 0x1a6   : > { %v399_v29 = vadd.f32 %v390_v28, %v376_v25 }
 0x1a7   : > { %v380_v30 = vpop.permute.xlu1 %379 }
 0x1a8   : > { %v407_v32 = vsub.f32 %v399_v29, %v403_v27  ;;  %v397_v33 = vadd.f32 %v380_v30, %v376_v25 }
 0x1aa   : > { %411 = vst.msk [vmem:[%s216_s23 + $0x10] sm:$0xff] %vm369_vm1, %v407_v32  ;;  %v405_v35 = vsub.f32 %v397_v33, %v401_v31 }
 0x1ac   : > { %409 = vst.msk [vmem:[%s216_s23] sm:$0xff] %vm369_vm1, %v405_v35 }
 0x1ad   : > { %v395_v38 = vpop.permute.xlu2 %394 }
 0x1ae   : > { %v400_v39 = vadd.f32 %v395_v38, %v376_v25 }
 0x1af   : > { %v385_v40 = vpop.permute.xlu1 %384 }
 0x1b0   : > { %v408_v42 = vsub.f32 %v400_v39, %v404_v36  ;;  %v398_v43 = vadd.f32 %v385_v40, %v376_v25 }
 0x1b2   : > { %412 = vst.msk [vmem:[%s216_s23 + $0x18] sm:$0xff] %vm369_vm1, %v408_v42  ;;  %v406_v44 = vsub.f32 %v398_v43, %v402_v41 }
 0x1b4   : > { %410 = vst.msk [vmem:[%s216_s23 + $0x8] sm:$0xff] %vm369_vm1, %v406_v44 }
 0x1b5 PF: > { %s12_s11 = sadd.s32 1, %s599_s11   ;;  %s674_s9 = smov %s595_s10 }
 0x1b6   : > { %p9_p5 = scmp.ge.s32.totalorder %s12_s11, 4   ;;  %s675_s10 = smov %s677_s12 }
 0x1b8   :  { %11 = sbr.rel (!%p9_p5) target bundleno = 2 (0x2), region = 61 }

// kernel: resconv_forward.3
= control target key start
LH: loop header
LB: loop body
LE: loop exit
PB: predicated region body
PF: predicated region fallthrough
CT: control target
= control target key end

     0   :  { %14 = vsyncpa [#allocation5], 0  ;;  %s3221_s0 = inlined_call_operand.vmem [shape: f32[2,3,8,32], index: 0, kind: input, shape index: {}]   ;;  %s3222_s1 = inlined_call_operand.vmem [shape: bf16[2,4,8,32], index: 1, kind: input, shape index: {}]   ;;  %s3223_s2 = inlined_call_operand.vmem [shape: bf16[32,8], index: 2, kind: input, shape index: {}]   ;;  %s3224_s3 = inlined_call_operand.vmem [shape: bf16[32,8], index: 3, kind: input, shape index: {}]   ;;  %s3225_s4 = inlined_call_operand.vmem [shape: f32[32,1], index: 4, kind: input, shape index: {}]   ;;  %s3226_s5 = inlined_call_operand.vmem [shape: bf16[32,32], index: 5, kind: input, shape index: {}]   ;;  %s3227_s6 = inlined_call_operand.vmem [shape: f32[32,1], index: 6, kind: input, shape index: {}]   ;;  %s3228_s7 = inlined_call_operand.vmem [shape: bf16[8,32], index: 7, kind: input, shape index: {}]   ;;  %s3229_s8 = inlined_call_operand.vmem [shape: f32[8,1], index: 8, kind: input, shape index: {}]   ;;  %s3230_s9 = inlined_call_operand.hbm [shape: f32[2,3,8,32], index: 9, kind: output, shape index: {}]  }
   0x1   :  { %16 = vsyncpa [#allocation5 + $0x1], 0  ;;  %s2681_s30 = smov 0   ;;  %s2683_s10 = smov 0  }
   0x2   :  { %s2685_s11 = smov 0   ;;  %s2687_s12 = smov 0  }
   0x3   :  { %s2689_s13 = smov 0   ;;  %s2691_s14 = smov 0  }
   0x4 LB: > { %s2218_s15 = sadd.s32 4294967295, %s2625_s14   ;;  %s2219_s16 = sadd.s32 4294967294, %s2625_s14   ;;  %s2625_s14 = sphi %s2691_s14, %s22_s14   ;;  %s2621_s13 = sphi %s2689_s13, %s3240_s13   ;;  %s2617_s12 = sphi %s2687_s12, %s3239_s12   ;;  %s2613_s11 = sphi %s2685_s11, %s3238_s11   ;;  %s2609_s10 = sphi %s2683_s10, %s3237_s10   ;;  %s2605_s30 = sphi %s2681_s30, %s3236_s30  }
   0x5   : > { %s41_s17 = sadd.s32 1, %s2621_s13  ;;  %s255_s18 = sadd.s32 1, %s2613_s11 }
   0x6   : > { %p43_p0 = scmp.ge.s32.totalorder %s41_s17, 2  ;;  %p265_p1 = scmp.ne.s32.totalorder %s2613_s11, %s2609_s10 }
   0x7   : > { %p266_p2 = scmp.eq.s32.totalorder %s2218_s15, 1  ;;  %p271_p3 = scmp.ne.s32.totalorder %s2609_s10, %s2605_s30 }
   0x8   : > { %s3242_s17 = smov (%p43_p0, %s41_s17), 0  ;;  %p272_p5 = scmp.eq.s32.totalorder %s2219_s16, 1 }
   0x9   : > { %3232 = sst [smem:[#allocation7_spill]] %s3242_s17  ;;  %p2721_p4 = por %p266_p2, %p265_p1 }
   0xa   : > { %s250_s20 = ssub.s32 %s2621_s13, %s3242_s17  ;;  %p2222_p6 = scmp.ge.s32.totalorder %s2625_s14, 1 }
   0xb   : > { %p253_p7 = scmp.eq.s32.totalorder %s250_s20, 0  ;;  %p2728_p8 = por %p272_p5, %p271_p3 }
   0xc   : > { %p338_p9 = scmp.lt.s32.totalorder %s2625_s14, 3 }
   0xd   : > { %s2734_s22 = scalar_select %p253_p7, %s2613_s11, %s255_s18  }
   0xe   : > { %p339_p10 = pnand %p2222_p6, %p338_p9 }
   0xf   : > { %p389_p11 = scmp.lt.s32.totalorder (!%p339_p10), %s2617_s12, 1  ;;  %s386_s25 = sand.u32 (!%p339_p10), 1, %s2609_s10  }
  0x10   : > { %342 = sbr.rel (%p339_p10) target bundleno = 1459 (0x5b3), region = 56 }
  0x11   : > { %s2479_s26 = smul.u32 (!%p339_p10), 24, %s386_s25 }
  0x15   : > { %v2739_v0 = vld [vmem:[%s3225_s4 + $0x10] sm:$0xff]  ;;  %v2744_v1 = vld [vmem:[%s3225_s4] sm:$0xff]  ;;  %v2627_v2 = vmov 0   ;;  %s390_s27 = scalar_select %p389_p11, %s2617_s12, 1  ;;  %vm462_vm0 = vcmask 1043456   ;;  %v424_v4 = vld [vmem:[%s3225_s4 + $0x18] sm:$0xff] }
  0x16   : > { %2542 = vset.pattern.permute.xlu1 %v2627_v2  ;;  %2541 = vset.pattern.permute.xlu0 %v2627_v2  ;;  %v422_v5 = vld [vmem:[%s3225_s4 + $0x8] sm:$0xff]  ;;  %v2447_v13 = vld [vmem:[%s3224_s3] sm:$0xff]  ;;  %vm455_vm1 = vcmask 64512   ;;  %v2795_v20 = vld [vmem:[%s3227_s6 + $0x10] sm:$0xff]  ;;  %vm485_vm2 = vcmask 261120  }
  0x17   : > { %437 = vperm.xlu0 %2541, %v2739_v0   ;;  %427 = vperm.xlu1 %2542, %v2744_v1   ;;  %s2480_s28 = smul.u32 24, %s390_s27  ;;  %s2440_s29 = sshll.u32 %s390_s27, 4  ;;  %v2441_v17 = vld [vmem:[%s3223_s2] sm:$0xff]  ;;  %v2801_v21 = vld [vmem:[%s3227_s6 + $0x18] sm:$0xff]  ;;  %v2448_v23 = vld [vmem:[%s3224_s3 + $0x8] sm:$0xff] }
  0x18   : > { %2543 = vset.pattern.permute.xlu2 %v2627_v2  ;;  %s2754_s18 = scalar_lea.vmem %s3222_s1, %s2440_s29  ;;  %v2443_v18 = vld [vmem:[%s3223_s2] sm:$0xff]  ;;  %v2442_v24 = vld [vmem:[%s3223_s2 + $0x8] sm:$0xff]  ;;  %s388_s27 = scalar_lea.vmem [#allocation4], %s2479_s26 }
  0x19   : > { %513 = vperm.xlu2 %2543, %v2739_v0   ;;  %s2759_s24 = scalar_lea.vmem %s3221_s0, %s2480_s28  ;;  %v641_v3 = vld [vmem:[%s2754_s18] sm:$0xf]  ;;  %v2444_v25 = vld [vmem:[%s3223_s2 + $0x8] sm:$0xff]  ;;  %s2481_s28 = smul.u32 24, %s2617_s12 }
  0x1a   : > { %v665_v6 = vsel %vm462_vm0, %v641_v3, 0  ;;  %v2070_v7 = vld [vmem:[%s2759_s24] sm:$0xff]  ;;  %v2433_v8 = vld [vmem:[%s2759_s24 + $0x8] sm:$0xff]  ;;  %v2435_v9 = vld [vmem:[%s2759_s24 + $0x10] sm:$0xff]  ;;  %s2113_s16 = sshll.u32 %s388_s27, 4  ;;  %s2100_s12 = scalar_lea.sflag [#allocation5], %s386_s25  ;;  %s2114_s16 = int_to_ptr.vmem [resolvable:$true] %s2113_s16 }
  0x1b   : > { %674 = vmatpush.bf16.msra.mxu3 %v665_v6  ;;  %v416_v10 = vpack.c.bf16 %v2070_v7, %v2070_v7  ;;  %v492_v11 = vpack.c.bf16 %v2433_v8, %v2433_v8  ;;  %v566_v12 = vpack.c.bf16 %v2435_v9, %v2435_v9  ;;  %v2445_v19 = vld [vmem:[%s3223_s2] sm:$0xff]  ;;  %v2822_v26 = vld [vmem:[%s3227_s6 + $0x8] sm:$0xff]  ;;  %s2112_s15 = scalar_lea.hbm %s3230_s9, %s2481_s28  ;;  %s2567_s29 = scalar_lea.hbm %s3230_s9, 48 }
  0x1c   : > { %v2806_v22 = vld [vmem:[%s3227_s6] sm:$0xff]  ;;  %v2446_v27 = vld [vmem:[%s3223_s2 + $0x8] sm:$0xff]  ;;  %s2115_s20 = sshll.u32 %s2112_s15, 4  ;;  %s2116_s20 = int_to_ptr.hbm [resolvable:$true] %s2115_s20 }
  0x1d   : > { %v464_v14 = vsel %vm462_vm0, %v416_v10, 0  ;;  %v538_v15 = vsel %vm462_vm0, %v492_v11, 0  ;;  %v612_v16 = vsel %vm462_vm0, %v566_v12, 0  ;;  %v2063_v60 = vld [vmem:[%s3229_s8] sm:$0xff] }
  0x1e   : > { %473 = vmatpush.bf16.msra.mxu0 %v464_v14  ;;  %547 = vmatpush.bf16.msra.mxu1 %v538_v15 }
  0x1f   : > { %442 = vperm.xlu0 %2541, %v424_v4   ;;  %432 = vperm.xlu1 %2542, %v422_v5  }
  0x20   : > { %621 = vmatpush.bf16.msra.mxu2 %v612_v16  ;;  %2266 = vmatmul.msk.bf16.vlgmr.msra.gmra.mxu3 %vm455_vm1, %v2447_v13 }
  0x21   : > { %518 = vperm.xlu2 %2543, %v424_v4   ;;  %2234 = vmatmul.msk.bf16.vlgmr.msra.gmra.mxu0 %vm455_vm1, %v2441_v17 }
  0x22   : > { %2245 = vmatmul.msk.bf16.vlgmr.msra.gmra.mxu1 %vm455_vm1, %v2443_v18 }
  0x23   : > { %2256 = vmatmul.msk.bf16.vlgmr.msra.gmra.mxu2 %vm455_vm1, %v2445_v19 }
  0x27   : > { %503 = vperm.xlu0 %2541, %v2744_v1   ;;  %508 = vperm.xlu1 %2542, %v422_v5  }
  0x29   : > { %720 = vperm.xlu2 %2543, %v2795_v20  }
  0x2f   : > { %725 = vperm.xlu0 %2541, %v2801_v21   ;;  %710 = vperm.xlu1 %2542, %v2806_v22  }
  0x30   : > { %2267 = vmatmul.msk.bf16.gmra.mxu3 %vm455_vm1, %v2448_v23 }
  0x31   : > { %715 = vperm.xlu2 %2543, %v2822_v26   ;;  %2235 = vmatmul.msk.bf16.gmra.mxu0 %vm455_vm1, %v2442_v24 }
  0x32   : > { %2246 = vmatmul.msk.bf16.gmra.mxu1 %vm455_vm1, %v2444_v25 }
  0x33   : > { %2257 = vmatmul.msk.bf16.gmra.mxu2 %vm455_vm1, %v2446_v27 }
  0x37   : > { %587 = vperm.xlu0 %2541, %v2739_v0   ;;  %592 = vperm.xlu1 %2542, %v424_v4  }
  0x39   : > { %577 = vperm.xlu2 %2543, %v2744_v1  }
  0x3f   : > { %582 = vperm.xlu0 %2541, %v422_v5   ;;  %825 = vperm.xlu1 %2542, %v2795_v20  }
  0x41   : > { %830 = vperm.xlu2 %2543, %v2801_v21  }
  0x47   : > { %815 = vperm.xlu0 %2541, %v2806_v22   ;;  %820 = vperm.xlu1 %2542, %v2822_v26  }
  0x49   : > { %930 = vperm.xlu2 %2543, %v2795_v20  }
  0x4f   : > { %935 = vperm.xlu0 %2541, %v2801_v21   ;;  %920 = vperm.xlu1 %2542, %v2806_v22  }
  0x51   : > { %925 = vperm.xlu2 %2543, %v2822_v26  }
  0x57   : > { %1078 = vperm.xlu0 %2541, %v2795_v20   ;;  %1083 = vperm.xlu1 %2542, %v2801_v21  }
  0x59   : > { %1068 = vperm.xlu2 %2543, %v2806_v22  }
  0x5f   : > { %1073 = vperm.xlu0 %2541, %v2822_v26   ;;  %1181 = vperm.xlu1 %2542, %v2795_v20  }
  0x61   : > { %1186 = vperm.xlu2 %2543, %v2801_v21  }
  0x67   : > { %1171 = vperm.xlu0 %2541, %v2806_v22   ;;  %1176 = vperm.xlu1 %2542, %v2822_v26  }
  0x69   : > { %1284 = vperm.xlu2 %2543, %v2795_v20  }
  0x6f   : > { %1289 = vperm.xlu0 %2541, %v2801_v21   ;;  %1274 = vperm.xlu1 %2542, %v2806_v22  }
  0x71   : > { %1279 = vperm.xlu2 %2543, %v2822_v26  }
  0x73   : > { %v514_v28 = vpop.permute.xlu2 %513 }
  0x77   : > { %1431 = vperm.xlu0 %2541, %v2795_v20   ;;  %1436 = vperm.xlu1 %2542, %v2801_v21  }
  0x79   : > { %1421 = vperm.xlu2 %2543, %v2806_v22  }
  0x7b   : > { %v2862_v29 = vpop.permute.xlu2 %518 }
  0x7f   : > { %1426 = vperm.xlu0 %2541, %v2822_v26   ;;  %1534 = vperm.xlu1 %2542, %v2795_v20  }
  0x81   : > { %1539 = vperm.xlu2 %2543, %v2801_v21  }
  0x83   : > { %v2867_v32 = vpop.permute.xlu2 %720 }
  0x87   : > { %1524 = vperm.xlu0 %2541, %v2806_v22   ;;  %1529 = vperm.xlu1 %2542, %v2822_v26  }
  0x89   : > { %v438_v30 = vpop.permute.xlu0 %437  ;;  %1637 = vperm.xlu2 %2543, %v2795_v20   ;;  %v428_v33 = vpop.permute.xlu1 %427 }
  0x8b   : > { %v2873_v35 = vpop.permute.xlu2 %715 }
  0x8f   : > { %1642 = vperm.xlu0 %2541, %v2801_v21   ;;  %1627 = vperm.xlu1 %2542, %v2806_v22  }
  0x91   : > { %v443_v31 = vpop.permute.xlu0 %442  ;;  %1632 = vperm.xlu2 %2543, %v2822_v26   ;;  %v433_v36 = vpop.permute.xlu1 %432 }
  0x93   : > { %v578_v43 = vpop.permute.xlu2 %577 }
  0x97   : > { %1784 = vperm.xlu0 %2541, %v2795_v20   ;;  %1789 = vperm.xlu1 %2542, %v2801_v21  }
  0x99   : > { %v504_v34 = vpop.permute.xlu0 %503  ;;  %1774 = vperm.xlu2 %2543, %v2806_v22   ;;  %v509_v44 = vpop.permute.xlu1 %508 }
  0x9e   : > { %v475_v37 = vpop.f32.mrf.mxu0 }
  0x9f   : > { %1779 = vperm.xlu0 %2541, %v2822_v26   ;;  %1887 = vperm.xlu1 %2542, %v2795_v20   ;;  %v549_v38 = vpop.f32.mrf.mxu1  ;;  %v476_v39 = vadd.f32 %v475_v37, %v428_v33 }
  0xa0   : > { %v550_v40 = vadd.f32 %v549_v38, %v504_v34 }
  0xa1   : > { %v2877_v41 = vpop.permute.xlu0 %725  ;;  %1892 = vperm.xlu2 %2543, %v2801_v21   ;;  %486 = vst.msk [vmem:[#allocation2] sm:$0xff] %vm485_vm2, %v476_v39  ;;  %v2898_v61 = vpop.permute.xlu1 %710 }
  0xa2   : > { %560 = vst.msk [vmem:[#allocation2 + $0x20] sm:$0xff] %vm485_vm2, %v550_v40 }
  0xa3   : > { %v2882_v42 = vpop.f32.mrf.mxu3 }
  0xa6   : > { %v623_v45 = vpop.f32.mrf.mxu2  ;;  %v477_v47 = vpop.f32.mrf.mxu0 }
  0xa7   : > { %1990 = vperm.xlu0 %2541, %v2795_v20   ;;  %1995 = vperm.xlu1 %2542, %v2801_v21   ;;  %v624_v46 = vadd.f32 %v623_v45, %v578_v43  ;;  %v551_v48 = vpop.f32.mrf.mxu1  ;;  %v478_v49 = vadd.f32 %v477_v47, %v433_v36  ;;  %v2301_v45 = vld [vmem:[%s2754_s18 + $0x4] sm:$0xf] }
  0xa8   : > { %v552_v50 = vadd.f32 %v551_v48, %v509_v44  ;;  %v2926_v20 = vld [vmem:[#allocation2] sm:$0xff]  ;;  %v1023_v48 = vsel %vm462_vm0, %v2301_v45, 0 }
  0xa9   : > { %v588_v51 = vpop.permute.xlu0 %587  ;;  %634 = vst.msk [vmem:[#allocation2 + $0x40] sm:$0xff] %vm485_vm2, %v624_v46  ;;  %1877 = vperm.xlu2 %2543, %v2806_v22   ;;  %v593_v10 = vpop.permute.xlu1 %592  ;;  %v2933_v24 = vld [vmem:[#allocation2 + $0x20] sm:$0xff] }
  0xaa   : > { %487 = vst.msk [vmem:[#allocation2 + $0x8] sm:$0xff] %vm485_vm2, %v478_v49  ;;  %v795_v34 = vadd.f32 %v2933_v24, %v2882_v42 }
  0xab   : > { %561 = vst.msk [vmem:[#allocation2 + $0x28] sm:$0xff] %vm485_vm2, %v552_v50  ;;  %v678_v52 = vpop.f32.mrf.mxu3  ;;  %v2449_v50 = vld [vmem:[%s3226_s5] sm:$0xff] }
  0xac   : > { %v799_v46 = vmax.f32 %v795_v34, 0.0 }
  0xae   : > { %v625_v53 = vpop.f32.mrf.mxu2  ;;  %v480_v54 = vpop.f32.mrf.mxu0 }
  0xaf   : > { %1882 = vperm.xlu0 %2541, %v2822_v26   ;;  %1980 = vperm.xlu1 %2542, %v2806_v22   ;;  %v554_v55 = vpop.f32.mrf.mxu1  ;;  %v481_v56 = vadd.f32 %v480_v54, %v438_v30  ;;  %v690_v30 = vadd.f32 %v2926_v20, %v2882_v42  ;;  %v2456_v54 = vld [vmem:[%s3224_s3 + $0x8] sm:$0xff] }
  0xb0   : > { %v555_v57 = vadd.f32 %v554_v55, %v514_v28  ;;  %v2903_v3 = vld [vmem:[#allocation2 + $0x40] sm:$0xff] }
  0xb1   : > { %v583_v58 = vpop.permute.xlu0 %582  ;;  %1985 = vperm.xlu2 %2543, %v2822_v26   ;;  %488 = vst.msk [vmem:[#allocation2 + $0x10] sm:$0xff] %vm485_vm2, %v481_v56  ;;  %v900_v6 = vadd.f32 %v2903_v3, %v2882_v42  ;;  %v2918_v15 = vld [vmem:[#allocation2 + $0x8] sm:$0xff]  ;;  %v694_v44 = vmax.f32 %v690_v30, 0.0  ;;  %v2451_v42 = vld [vmem:[%s3226_s5] sm:$0xff] }
  0xb2   : > { %v626_v59 = vadd.f32 %v625_v53, %v583_v58  ;;  %562 = vst.msk [vmem:[#allocation2 + $0x30] sm:$0xff] %vm485_vm2, %v555_v57  ;;  %v2920_v17 = vld [vmem:[#allocation2 + $0x28] sm:$0xff]  ;;  %v691_v25 = vadd.f32 %v2918_v15, %v678_v52  ;;  %v2455_v53 = vld [vmem:[%s3224_s3] sm:$0xff] }
  0xb3   : > { %v2901_v62 = vpop.f32.mrf.mxu3  ;;  %v904_v13 = vmax.f32 %v900_v6, 0.0  ;;  %v796_v28 = vadd.f32 %v2920_v17, %v678_v52 }
  0xb4   : > { %635 = vst.msk [vmem:[#allocation2 + $0x48] sm:$0xff] %vm485_vm2, %v626_v59  ;;  %v695_v39 = vmax.f32 %v691_v25, 0.0 }
  0xb5   : > { %v800_v43 = vmax.f32 %v796_v28, 0.0 }
  0xb6   : > { %v628_v63 = vpop.f32.mrf.mxu2  ;;  %v482_v1 = vpop.f32.mrf.mxu0  ;;  %v702_v47 = vpack.c.bf16 %v695_v39, %v694_v44 }
  0xb7   : > { %2066 = vperm.xlu0 %2541, %v2063_v60   ;;  %2077 = vperm.xlu1 %2542, %v2063_v60   ;;  %v629_v0 = vadd.f32 %v628_v63, %v588_v51  ;;  %v556_v2 = vpop.f32.mrf.mxu1  ;;  %v483_v4 = vadd.f32 %v482_v1, %v443_v31  ;;  %v807_v49 = vpack.c.bf16 %v800_v43, %v799_v46  ;;  %v2450_v51 = vld [vmem:[%s3226_s5 + $0x8] sm:$0xff]  ;;  %v2453_v46 = vld [vmem:[%s3226_s5] sm:$0xff] }
  0xb8   : > { %v557_v5 = vadd.f32 %v556_v2, %v2862_v29  ;;  %v2914_v9 = vld [vmem:[#allocation2 + $0x10] sm:$0xff] }
  0xb9   : > { %636 = vst.msk [vmem:[#allocation2 + $0x50] sm:$0xff] %vm485_vm2, %v629_v0  ;;  %2090 = vperm.xlu2 %2543, %v2063_v60   ;;  %v2916_v11 = vld [vmem:[#allocation2 + $0x30] sm:$0xff]  ;;  %v692_v18 = vadd.f32 %v2914_v9, %v2901_v62  ;;  %v826_v60 = vpop.permute.xlu1 %825 }
  0xba   : > { %489 = vst.msk [vmem:[#allocation2 + $0x18] sm:$0xff] %vm485_vm2, %v483_v4  ;;  %v797_v21 = vadd.f32 %v2916_v11, %v2901_v62 }
  0xbb   : > { %563 = vst.msk [vmem:[#allocation2 + $0x38] sm:$0xff] %vm485_vm2, %v557_v5  ;;  %v2911_v7 = vld [vmem:[#allocation2 + $0x48] sm:$0xff]  ;;  %v683_v22 = vpop.f32.mrf.mxu3  ;;  %v696_v31 = vmax.f32 %v692_v18, 0.0 }
  0xbc   : > { %v901_v8 = vadd.f32 %v2911_v7, %v678_v52  ;;  %v801_v36 = vmax.f32 %v797_v21, 0.0  ;;  %v2452_v52 = vld [vmem:[%s3226_s5 + $0x8] sm:$0xff] }
  0xbe   : > { %v630_v12 = vpop.f32.mrf.mxu2  ;;  %v905_v14 = vmax.f32 %v901_v8, 0.0 }
  0xbf   : > { %v631_v16 = vadd.f32 %v630_v12, %v593_v10 }
  0xc0   : > { %v2924_v19 = vpack.c.bf16 %v905_v14, %v904_v13  ;;  %v2976_v6 = vld [vmem:[#allocation2 + $0x50] sm:$0xff] }
  0xc1   : > { %v2930_v23 = vld [vmem:[#allocation2 + $0x18] sm:$0xff]  ;;  %637 = vst.msk [vmem:[#allocation2 + $0x58] sm:$0xff] %vm485_vm2, %v631_v16  ;;  %v902_v14 = vadd.f32 %v2976_v6, %v2901_v62  ;;  %v821_v18 = vpop.permute.xlu1 %820  ;;  %v768_v62 = vld [vmem:[%s3228_s7] sm:$0xf] }
  0xc2   : > { %v693_v26 = vadd.f32 %v2930_v23, %v683_v22  ;;  %v2937_v27 = vld [vmem:[#allocation2 + $0x38] sm:$0xff] }
  0xc3   : > { %v798_v29 = vadd.f32 %v2937_v27, %v683_v22 }
  0xc4   : > { %v697_v33 = vmax.f32 %v693_v26, 0.0  ;;  %v831_v26 = vpop.permute.xlu2 %830 }
  0xc5   : > { %v802_v37 = vmax.f32 %v798_v29, 0.0 }
  0xc6   : > { %v703_v38 = vpack.c.bf16 %v697_v33, %v696_v31  ;;  %v816_v31 = vpop.permute.xlu0 %815 }
  0xc7   : > { %v808_v40 = vpack.c.bf16 %v802_v37, %v801_v36 }
  0xc8   : > { %751 = vmatpush.bf16.msrb.mxu0 %v703_v38  ;;  %v2972_v1 = vld [vmem:[#allocation2 + $0x58] sm:$0xff] }
  0xc9   : > { %855 = vmatpush.bf16.msrb.mxu2 %v808_v40  ;;  %v903_v8 = vadd.f32 %v2972_v1, %v683_v22  ;;  %v906_v22 = vmax.f32 %v902_v14, 0.0 }
  0xcb   : > { %v907_v25 = vmax.f32 %v903_v8, 0.0 }
  0xcc   : > { %752 = vmatpush.bf16.msrb.mxu0 %v702_v47 }
  0xcd   : > { %856 = vmatpush.bf16.msrb.mxu2 %v807_v49  ;;  %v913_v37 = vpack.c.bf16 %v907_v25, %v906_v22  ;;  %v2462_v22 = vld [vmem:[%s3226_s5 + $0x8] sm:$0xff] }
  0xcf   : > { %2276 = vmatmul.msk.bf16.vlgmr.msrb.gmra.mxu0 %vm485_vm2, %v2449_v50 }
  0xd0   : > { %1032 = vmatpush.bf16.msra.mxu0 %v1023_v48  ;;  %2287 = vmatmul.msk.bf16.vlgmr.msrb.gmra.mxu2 %vm485_vm2, %v2451_v42 }
  0xdf   : > { %2277 = vmatmul.msk.bf16.gmra.mxu0 %vm485_vm2, %v2450_v51 }
  0xe0   : > { %2288 = vmatmul.msk.bf16.gmra.mxu2 %vm485_vm2, %v2452_v52 }
  0xef   : > { %2310 = vmatmul.msk.bf16.vlgmr.msra.gmra.mxu0 %vm455_vm1, %v2455_v53 }
  0xff   : > { %2311 = vmatmul.msk.bf16.gmra.mxu0 %vm455_vm1, %v2456_v54 }
 0x14c   : > { %v754_v55 = vpop.f32.mrf.mxu0 }
 0x14d   : > { %v755_v10 = vadd.f32 %v754_v55, %v2898_v61 }
 0x153   : > { %v858_v56 = vpop.f32.mrf.mxu2 }
 0x154   : > { %v756_v57 = vpop.f32.mrf.mxu0  ;;  %v859_v33 = vadd.f32 %v858_v56, %v816_v31  ;;  %v2460_v31 = vld [vmem:[%s3226_s5 + $0x8] sm:$0xff] }
 0x155   : > { %v757_v4 = vadd.f32 %v756_v57, %v2873_v35  ;;  %v764_v35 = vmax.f32 %v755_v10, 0.0 }
 0x156   : > { %v868_v40 = vmax.f32 %v859_v33, 0.0 }
 0x15b   : > { %v860_v58 = vpop.f32.mrf.mxu2 }
 0x15c   : > { %v759_v59 = vpop.f32.mrf.mxu0 }
 0x15d   : > { %v760_v63 = vadd.f32 %v759_v59, %v2867_v32  ;;  %v765_v32 = vmax.f32 %v757_v4, 0.0 }
 0x15f   : > { %v766_v12 = vmax.f32 %v760_v63, 0.0  ;;  %v769_v61 = vpack.c.bf16 %v765_v32, %v764_v35  ;;  %v2457_v35 = vld [vmem:[%s3226_s5] sm:$0xff] }
 0x163   : > { %v863_v0 = vpop.f32.mrf.mxu2 }
 0x164   : > { %v761_v2 = vpop.f32.mrf.mxu0  ;;  %v864_v21 = vadd.f32 %v863_v0, %v826_v60 }
 0x165   : > { %v762_v5 = vadd.f32 %v761_v2, %v2877_v41  ;;  %v861_v41 = vadd.f32 %v860_v58, %v821_v18 }
 0x166   : > { %v870_v34 = vmax.f32 %v864_v21, 0.0 }
 0x167   : > { %v767_v13 = vmax.f32 %v762_v5, 0.0  ;;  %v869_v38 = vmax.f32 %v861_v41, 0.0  ;;  %v2628_v41 = vmov -inf  }
 0x168   : > { %638 = vst.msk [vmem:[#allocation3] sm:$0xff] %vm485_vm2, %v2628_v41 }
 0x169   : > { %v770_v16 = vpack.c.bf16 %v767_v13, %v766_v12  ;;  %v873_v44 = vpack.c.bf16 %v869_v38, %v868_v40  ;;  %639 = vst.msk [vmem:[#allocation3 + $0x8] sm:$0xff] %vm485_vm2, %v2628_v41  ;;  %v936_v38 = vpop.permute.xlu0 %935 }
 0x16a   : > { %640 = vst.msk [vmem:[#allocation3 + $0x10] sm:$0xff] %vm485_vm2, %v2628_v41 }
 0x16b   : > { %v865_v28 = vpop.f32.mrf.mxu2  ;;  %780 = vmatpush.bf16.msrb.mxu1 %v770_v16 }
 0x16c   : > { %v866_v29 = vadd.f32 %v865_v28, %v831_v26  ;;  %v1034_v30 = vpop.f32.mrf.mxu0  ;;  %v2454_v26 = vld [vmem:[%s3226_s5 + $0x8] sm:$0xff]  ;;  %v2461_v28 = vld [vmem:[%s3226_s5] sm:$0xff] }
 0x16d   : > { %v1048_v50 = vadd.f32 %v1034_v30, %v2926_v20  ;;  %v1151_v55 = vadd.f32 %v1034_v30, %v2933_v24  ;;  %v1254_v2 = vadd.f32 %v2903_v3, %v1034_v30  ;;  %v2459_v30 = vld [vmem:[%s3226_s5] sm:$0xff] }
 0x16e   : > { %v871_v36 = vmax.f32 %v866_v29, 0.0  ;;  %v2458_v29 = vld [vmem:[%s3226_s5 + $0x8] sm:$0xff] }
 0x16f   : > { %781 = vmatpush.bf16.msrb.mxu1 %v769_v61  ;;  %v1052_v14 = vmax.f32 %v1048_v50, 0.0  ;;  %v1155_v32 = vmax.f32 %v1151_v55, 0.0  ;;  %v1258_v16 = vmax.f32 %v1254_v2, 0.0  ;;  %v787_v61 = vld [vmem:[#allocation3] sm:$0xff] }
 0x170   : > { %v874_v39 = vpack.c.bf16 %v871_v36, %v870_v34  ;;  %v872_v36 = vld [vmem:[%s3228_s7] sm:$0xf] }
 0x172   : > { %884 = vmatpush.bf16.msrb.mxu3 %v874_v39  ;;  %2278 = vmatmul.msk.bf16.vlgmr.msrb.gmra.mxu1 %vm485_vm2, %v768_v62 }
 0x173   : > { %960 = vmatpush.bf16.msra.mxu1 %v913_v37  ;;  %v931_v37 = vpop.permute.xlu2 %930 }
 0x174   : > { %v1036_v43 = vpop.f32.mrf.mxu0 }
 0x175   : > { %v1152_v51 = vadd.f32 %v1036_v43, %v2920_v17  ;;  %v1255_v56 = vadd.f32 %v1036_v43, %v2911_v7 }
 0x176   : > { %885 = vmatpush.bf16.msrb.mxu3 %v873_v44 }
 0x177   : > { %961 = vmatpush.bf16.msra.mxu1 %v2924_v19  ;;  %v1049_v19 = vadd.f32 %v1036_v43, %v2918_v15  ;;  %v1156_v5 = vmax.f32 %v1152_v51, 0.0  ;;  %v1259_v13 = vmax.f32 %v1255_v56, 0.0  ;;  %v921_v43 = vpop.permute.xlu1 %920 }
 0x179   : > { %v1053_v4 = vmax.f32 %v1049_v19, 0.0  ;;  %v1163_v21 = vpack.c.bf16 %v1156_v5, %v1155_v32  ;;  %v1266_v25 = vpack.c.bf16 %v1259_v13, %v1258_v16  ;;  %2289 = vmatmul.msk.bf16.vlgmr.msrb.gmra.mxu3 %vm485_vm2, %v872_v36 }
 0x17b   : > { %v1060_v18 = vpack.c.bf16 %v1053_v4, %v1052_v14  ;;  %v926_v40 = vpop.permute.xlu2 %925  ;;  %v977_v14 = vld [vmem:[%s3228_s7] sm:$0xf] }
 0x17c   : > { %v1039_v45 = vpop.f32.mrf.mxu0 }
 0x17d   : > { %v1050_v47 = vadd.f32 %v1039_v45, %v2914_v9  ;;  %v1153_v48 = vadd.f32 %v1039_v45, %v2916_v11  ;;  %v1256_v49 = vadd.f32 %v1039_v45, %v2976_v6  ;;  %v1079_v45 = vpop.permute.xlu0 %1078 }
 0x17f   : > { %v1054_v57 = vmax.f32 %v1050_v47, 0.0  ;;  %v1157_v58 = vmax.f32 %v1153_v48, 0.0  ;;  %v1260_v59 = vmax.f32 %v1256_v49, 0.0  ;;  %v1084_v47 = vpop.permute.xlu1 %1083 }
 0x182   : > { %2298 = vmatmul.msk.bf16.vlgmr.msra.gmra.mxu1 %vm485_vm2, %v2453_v46 }
 0x183   : > { %v1069_v46 = vpop.permute.xlu2 %1068 }
 0x184   : > { %v1041_v42 = vpop.f32.mrf.mxu0 }
 0x185   : > { %v1051_v52 = vadd.f32 %v1041_v42, %v2930_v23  ;;  %v1154_v53 = vadd.f32 %v1041_v42, %v2937_v27  ;;  %v1257_v54 = vadd.f32 %v1041_v42, %v2972_v1  ;;  %v1074_v50 = vpop.permute.xlu0 %1073 }
 0x187   : > { %v1055_v60 = vmax.f32 %v1051_v52, 0.0  ;;  %v1158_v63 = vmax.f32 %v1154_v53, 0.0  ;;  %v1261_v0 = vmax.f32 %v1257_v54, 0.0  ;;  %v1182_v51 = vpop.permute.xlu1 %1181 }
 0x189   : > { %v1061_v8 = vpack.c.bf16 %v1055_v60, %v1054_v57  ;;  %v1164_v10 = vpack.c.bf16 %v1158_v63, %v1157_v58  ;;  %v1267_v12 = vpack.c.bf16 %v1261_v0, %v1260_v59 }
 0x18b   : > { %1108 = vmatpush.bf16.msra.mxu2 %v1061_v8  ;;  %1211 = vmatpush.bf16.msrb.mxu1 %v1164_v10  ;;  %v1187_v19 = vpop.permute.xlu2 %1186 }
 0x18c   : > { %1314 = vmatpush.bf16.msrb.mxu0 %v1267_v12 }
 0x18d   : > { %v1172_v0 = vpop.permute.xlu0 %1171 }
 0x18f   : > { %1109 = vmatpush.bf16.msra.mxu2 %v1060_v18  ;;  %1212 = vmatpush.bf16.msrb.mxu1 %v1163_v21  ;;  %v1177_v10 = vpop.permute.xlu1 %1176 }
 0x190   : > { %1315 = vmatpush.bf16.msrb.mxu0 %v1266_v25 }
 0x192   : > { %2299 = vmatmul.msk.bf16.gmra.mxu1 %vm485_vm2, %v2454_v26  ;;  %2320 = vmatmul.msk.bf16.vlgmr.msra.gmra.mxu2 %vm485_vm2, %v2457_v35 }
 0x193   : > { %2342 = vmatmul.msk.bf16.vlgmr.msrb.gmra.mxu0 %vm485_vm2, %v2461_v28  ;;  %v1285_v4 = vpop.permute.xlu2 %1284 }
 0x195   : > { %v1290_v16 = vpop.permute.xlu0 %1289 }
 0x197   : > { %v1275_v41 = vpop.permute.xlu1 %1274 }
 0x19b   : > { %v1280_v25 = vpop.permute.xlu2 %1279 }
 0x1a2   : > { %2321 = vmatmul.msk.bf16.gmra.mxu2 %vm485_vm2, %v2458_v29  ;;  %2331 = vmatmul.msk.bf16.vlgmr.msrb.gmra.mxu1 %vm485_vm2, %v2459_v30 }
 0x1a3   : > { %2343 = vmatmul.msk.bf16.gmra.mxu0 %vm485_vm2, %v2462_v22 }
 0x1b2   : > { %2332 = vmatmul.msk.bf16.gmra.mxu1 %vm485_vm2, %v2460_v31 }
 0x1ef   : > { %v783_v33 = vpop.f32.mrf.mxu1 }
 0x1f0   : > { %v788_v34 = vmax.f32 %v787_v61, %v783_v33 }
 0x1f2   : > { %789 = vst.msk [vmem:[#allocation3] sm:$0xff] %vm485_vm2, %v788_v34 }
 0x1f7   : > { %v785_v62 = vpop.f32.mrf.mxu1 }
 0x1ff   : > { %v963_v39 = vpop.f32.mrf.mxu1 }
 0x200   : > { %v964_v57 = vadd.f32 %v963_v39, %v921_v43 }
 0x202   : > { %v973_v5 = vmax.f32 %v964_v57, 0.0 }
 0x207   : > { %v965_v44 = vpop.f32.mrf.mxu1 }
 0x208   : > { %v966_v54 = vadd.f32 %v965_v44, %v926_v40 }
 0x20a   : > { %v974_v60 = vmax.f32 %v966_v54, 0.0 }
 0x20c   : > { %v978_v12 = vpack.c.bf16 %v974_v60, %v973_v5  ;;  %v2345_v60 = vld [vmem:[%s2754_s18 + $0x8] sm:$0xf] }
 0x20d   : > { %v892_v5 = vld [vmem:[#allocation3 + $0x8] sm:$0xff] }
 0x20f   : > { %v968_v48 = vpop.f32.mrf.mxu1 }
 0x210   : > { %v1317_v49 = vpop.f32.mrf.mxu0  ;;  %v969_v52 = vadd.f32 %v968_v48, %v931_v37 }
 0x211   : > { %v1318_v29 = vadd.f32 %v1317_v49, %v1275_v41  ;;  %v1331_v49 = vld [vmem:[%s3228_s7] sm:$0xf] }
 0x212   : > { %v975_v58 = vmax.f32 %v969_v52, 0.0 }
 0x213   : > { %v1327_v62 = vmax.f32 %v1318_v29, 0.0 }
 0x215   : > { %v1111_v42 = vpop.f32.mrf.mxu2 }
 0x216   : > { %v1112_v39 = vadd.f32 %v1111_v42, %v1069_v46  ;;  %v1125_v42 = vld [vmem:[%s3228_s7] sm:$0xf] }
 0x217   : > { %v970_v53 = vpop.f32.mrf.mxu1 }
 0x218   : > { %v971_v55 = vadd.f32 %v970_v53, %v936_v38  ;;  %v1319_v56 = vpop.f32.mrf.mxu0 }
 0x219   : > { %v1320_v35 = vadd.f32 %v1319_v56, %v1280_v25 }
 0x21a   : > { %v976_v59 = vmax.f32 %v971_v55, 0.0 }
 0x21b   : > { %v1328_v61 = vmax.f32 %v1320_v35, 0.0  ;;  %v1144_v35 = vld [vmem:[#allocation3] sm:$0xff] }
 0x21c   : > { %v979_v63 = vpack.c.bf16 %v976_v59, %v975_v58 }
 0x21d   : > { %v1113_v2 = vpop.f32.mrf.mxu2  ;;  %v1332_v44 = vpack.c.bf16 %v1328_v61, %v1327_v62 }
 0x21e   : > { %989 = vmatpush.bf16.msra.mxu3 %v979_v63  ;;  %v1114_v36 = vadd.f32 %v1113_v2, %v1074_v50  ;;  %v1376_v2 = vsel %vm462_vm0, %v2345_v60, 0 }
 0x21f   : > { %v1214_v8 = vpop.f32.mrf.mxu1 }
 0x220   : > { %v1322_v13 = vpop.f32.mrf.mxu0  ;;  %v1122_v48 = vmax.f32 %v1114_v36, 0.0  ;;  %v1215_v55 = vadd.f32 %v1214_v8, %v1172_v0  ;;  %v2463_v0 = vld [vmem:[%s3224_s3] sm:$0xff]  ;;  %v887_v8 = vpop.f32.mrf.mxu3 }
 0x221   : > { %v1323_v18 = vadd.f32 %v1322_v13, %v1285_v4  ;;  %v2464_v4 = vld [vmem:[%s3224_s3 + $0x8] sm:$0xff]  ;;  %v997_v13 = vld [vmem:[#allocation3 + $0x10] sm:$0xff] }
 0x222   : > { %990 = vmatpush.bf16.msra.mxu3 %v978_v12  ;;  %v1224_v63 = vmax.f32 %v1215_v55, 0.0 }
 0x223   : > { %v1329_v30 = vmax.f32 %v1323_v18, 0.0 }
 0x225   : > { %2300 = vmatmul.msk.bf16.vlgmr.msra.gmra.mxu3 %vm485_vm2, %v977_v14  ;;  %v1116_v32 = vpop.f32.mrf.mxu2 }
 0x226   : > { %v1117_v31 = vadd.f32 %v1116_v32, %v1079_v45  ;;  %v1121_v45 = vmax.f32 %v1112_v39, 0.0 }
 0x227   : > { %v1216_v21 = vpop.f32.mrf.mxu1 }
 0x228   : > { %v1324_v26 = vpop.f32.mrf.mxu0  ;;  %v1123_v40 = vmax.f32 %v1117_v31, 0.0  ;;  %v1126_v53 = vpack.c.bf16 %v1122_v48, %v1121_v45  ;;  %v1217_v54 = vadd.f32 %v1216_v21, %v1177_v10  ;;  %v893_v10 = vmax.f32 %v892_v5, %v887_v8  ;;  %v889_v12 = vpop.f32.mrf.mxu3 }
 0x229   : > { %v1325_v28 = vadd.f32 %v1324_v26, %v1290_v16  ;;  %v1432_v5 = vpop.permute.xlu0 %1431  ;;  %v1422_v12 = vpop.permute.xlu2 %1421 }
 0x22a   : > { %v1225_v58 = vmax.f32 %v1217_v54, 0.0  ;;  %894 = vst.msk [vmem:[#allocation3 + $0x8] sm:$0xff] %vm485_vm2, %v893_v10 }
 0x22b   : > { %v1330_v22 = vmax.f32 %v1325_v28, 0.0 }
 0x22d   : > { %v1333_v33 = vpack.c.bf16 %v1330_v22, %v1329_v30  ;;  %v1118_v34 = vpop.f32.mrf.mxu2 }
 0x22e   : > { %v1119_v37 = vadd.f32 %v1118_v34, %v1084_v47 }
 0x22f   : > { %1343 = vmatpush.bf16.msrb.mxu2 %v1333_v33  ;;  %v1219_v38 = vpop.f32.mrf.mxu1 }
 0x230   : > { %v1124_v43 = vmax.f32 %v1119_v37, 0.0  ;;  %v1220_v50 = vadd.f32 %v1219_v38, %v1182_v51  ;;  %v1229_v51 = vpack.c.bf16 %v1225_v58, %v1224_v63  ;;  %v2465_v63 = vld [vmem:[%s3226_s5] sm:$0xff] }
 0x231   : > { %v1247_v22 = vld [vmem:[#allocation3 + $0x8] sm:$0xff] }
 0x232   : > { %v1127_v52 = vpack.c.bf16 %v1124_v43, %v1123_v40  ;;  %v1226_v56 = vmax.f32 %v1220_v50, 0.0 }
 0x233   : > { %1344 = vmatpush.bf16.msrb.mxu2 %v1332_v44 }
 0x234   : > { %1137 = vmatpush.bf16.msrb.mxu3 %v1127_v52 }
 0x236   : > { %2344 = vmatmul.msk.bf16.vlgmr.msrb.gmra.mxu2 %vm485_vm2, %v1331_v49 }
 0x237   : > { %v1221_v47 = vpop.f32.mrf.mxu1 }
 0x238   : > { %v1222_v46 = vadd.f32 %v1221_v47, %v1187_v19  ;;  %1138 = vmatpush.bf16.msrb.mxu3 %v1126_v53  ;;  %v1228_v19 = vld [vmem:[%s3228_s7] sm:$0xf] }
 0x23a   : > { %v1227_v57 = vmax.f32 %v1222_v46, 0.0 }
 0x23b   : > { %2322 = vmatmul.msk.bf16.vlgmr.msrb.gmra.mxu3 %vm485_vm2, %v1125_v42 }
 0x23c   : > { %v1230_v59 = vpack.c.bf16 %v1227_v57, %v1226_v56 }
 0x23e   : > { %1240 = vmatpush.bf16.msra.mxu3 %v1230_v59 }
 0x242   : > { %1241 = vmatpush.bf16.msra.mxu3 %v1229_v51  ;;  %v2467_v51 = vld [vmem:[%s3226_s5] sm:$0xff] }
 0x246   : > { %1385 = vmatpush.bf16.msrb.mxu3 %v1376_v2  ;;  %v2469_v2 = vld [vmem:[%s3226_s5] sm:$0xff] }
 0x24b   : > { %2333 = vmatmul.msk.bf16.vlgmr.msra.gmra.mxu3 %vm485_vm2, %v1228_v19  ;;  %v2466_v19 = vld [vmem:[%s3226_s5 + $0x8] sm:$0xff] }
 0x25b   : > { %2354 = vmatmul.msk.bf16.vlgmr.msrb.gmra.mxu3 %vm455_vm1, %v2463_v0  ;;  %v2468_v0 = vld [vmem:[%s3226_s5 + $0x8] sm:$0xff] }
 0x26b   : > { %2355 = vmatmul.msk.bf16.gmra.mxu3 %vm455_vm1, %v2464_v4  ;;  %v2470_v4 = vld [vmem:[%s3226_s5 + $0x8] sm:$0xff] }
 0x2a8   : > { %v992_v14 = vpop.f32.mrf.mxu3 }
 0x2a9   : > { %v998_v32 = vmax.f32 %v997_v13, %v992_v14  ;;  %v1437_v13 = vpop.permute.xlu1 %1436 }
 0x2ab   : > { %999 = vst.msk [vmem:[#allocation3 + $0x10] sm:$0xff] %vm485_vm2, %v998_v32 }
 0x2b0   : > { %v994_v16 = vpop.f32.mrf.mxu3 }
 0x2b2   : > { %v1350_v18 = vld [vmem:[#allocation3 + $0x10] sm:$0xff] }
 0x2b9   : > { %v1346_v21 = vpop.f32.mrf.mxu2 }
 0x2ba   : > { %v1351_v25 = vmax.f32 %v1350_v18, %v1346_v21  ;;  %v1427_v18 = vpop.permute.xlu0 %1426  ;;  %v1540_v21 = vpop.permute.xlu2 %1539 }
 0x2bc   : > { %1352 = vst.msk [vmem:[#allocation3 + $0x10] sm:$0xff] %vm485_vm2, %v1351_v25  ;;  %v1535_v25 = vpop.permute.xlu1 %1534 }
 0x2be   : > { %v1140_v26 = vpop.f32.mrf.mxu3 }
 0x2bf   : > { %v1145_v28 = vmax.f32 %v1144_v35, %v1140_v26 }
 0x2c1   : > { %1146 = vst.msk [vmem:[#allocation3] sm:$0xff] %vm485_vm2, %v1145_v28  ;;  %v1348_v41 = vpop.f32.mrf.mxu2 }
 0x2c2   : > { %v1525_v41 = vpop.permute.xlu0 %1524 }
 0x2c6   : > { %v1142_v29 = vpop.f32.mrf.mxu3 }
 0x2c7   : > { %v1638_v29 = vpop.permute.xlu2 %1637 }
 0x2ce   : > { %v1243_v30 = vpop.f32.mrf.mxu3 }
 0x2cf   : > { %v1248_v31 = vmax.f32 %v1247_v22, %v1243_v30  ;;  %v1530_v30 = vpop.permute.xlu1 %1529 }
 0x2d1   : > { %1249 = vst.msk [vmem:[#allocation3 + $0x8] sm:$0xff] %vm485_vm2, %v1248_v31 }
 0x2d6   : > { %v1245_v61 = vpop.f32.mrf.mxu3 }
 0x2de   : > { %v1387_v33 = vpop.f32.mrf.mxu3 }
 0x2df   : > { %v1401_v39 = vadd.f32 %v1387_v33, %v2926_v20  ;;  %v1504_v45 = vadd.f32 %v1387_v33, %v2933_v24 }
 0x2e1   : > { %v1405_v56 = vmax.f32 %v1401_v39, 0.0  ;;  %v1508_v57 = vmax.f32 %v1504_v45, 0.0 }
 0x2e6   : > { %v1389_v34 = vpop.f32.mrf.mxu3 }
 0x2e7   : > { %v1402_v40 = vadd.f32 %v1389_v34, %v2918_v15  ;;  %v1505_v44 = vadd.f32 %v1389_v34, %v2920_v17  ;;  %v1607_v15 = vadd.f32 %v1387_v33, %v2903_v3 }
 0x2e9   : > { %v1406_v46 = vmax.f32 %v1402_v40, 0.0  ;;  %v1509_v17 = vmax.f32 %v1505_v44, 0.0  ;;  %v1611_v24 = vmax.f32 %v1607_v15, 0.0 }
 0x2eb   : > { %v1413_v58 = vpack.c.bf16 %v1406_v46, %v1405_v56  ;;  %v1516_v59 = vpack.c.bf16 %v1509_v17, %v1508_v57  ;;  %v1478_v56 = vld [vmem:[%s3228_s7] sm:$0xf]  ;;  %v2389_v57 = vld [vmem:[%s2754_s18 + $0xc] sm:$0xf]  ;;  %s2561_s18 = sshra.s32 %s2116_s20, 4  ;;  %s2562_s18 = int_to_ptr.hbm [resolvable:$true] %s2561_s18 }
 0x2ec   : > { %s2563_s23 = scalar_lea.hbm %s2562_s18, 24  ;;  %p2568_p1 = scmp.lt.s32.totalorder %s2562_s18, %s3230_s9 }
 0x2ed   : > { %p2564_p12 = scmp.ne.s32.totalorder %s2562_s18, %s2563_s23  ;;  %p2569_p2 = scmp.lt.s32.totalorder %s2567_s29, %s2563_s23 }
 0x2ee   : > { %v1392_v36 = vpop.f32.mrf.mxu3 }
 0x2ef   : > { %v1403_v37 = vadd.f32 %v1392_v36, %v2914_v9  ;;  %v1506_v62 = vadd.f32 %v1392_v36, %v2916_v11  ;;  %v1609_v38 = vadd.f32 %v1392_v36, %v2976_v6  ;;  %v1608_v9 = vadd.f32 %v1389_v34, %v2911_v7  ;;  %p2565_p13 = pnand %p2564_p12, %p2721_p4  ;;  %p2570_p3 = por %p2569_p2, %p2568_p1 }
 0x2f1   : > { %v1407_v11 = vmax.f32 %v1403_v37, 0.0  ;;  %v1510_v53 = vmax.f32 %v1506_v62, 0.0  ;;  %v1613_v50 = vmax.f32 %v1609_v38, 0.0  ;;  %p2566_p0 = pneg %p2565_p13 }
 0x2f3   : > { %p2571_p5 = pnand %p2570_p3, %p2566_p0 }
 0x2f6   : > { %v1394_v43 = vpop.f32.mrf.mxu3 }
 0x2f7   : > { %v1404_v48 = vadd.f32 %v1394_v43, %v2930_v23  ;;  %v1507_v52 = vadd.f32 %v1394_v43, %v2937_v27  ;;  %v1610_v49 = vadd.f32 %v1394_v43, %v2972_v1  ;;  %v1612_v27 = vmax.f32 %v1608_v9, 0.0  ;;  %v1633_v9 = vpop.permute.xlu2 %1632 }
 0x2f9   : > { %v1408_v47 = vmax.f32 %v1404_v48, 0.0  ;;  %v1511_v20 = vmax.f32 %v1507_v52, 0.0  ;;  %v1614_v54 = vmax.f32 %v1610_v49, 0.0  ;;  %v1619_v60 = vpack.c.bf16 %v1612_v27, %v1611_v24  ;;  %v1643_v48 = vpop.permute.xlu0 %1642 }
 0x2fb   : > { %v1414_v42 = vpack.c.bf16 %v1408_v47, %v1407_v11  ;;  %v1517_v23 = vpack.c.bf16 %v1511_v20, %v1510_v53  ;;  %v1620_v55 = vpack.c.bf16 %v1614_v54, %v1613_v50  ;;  %v1628_v50 = vpop.permute.xlu1 %1627 }
 0x2fd   : > { %1461 = vmatpush.bf16.msra.mxu1 %v1414_v42  ;;  %1564 = vmatpush.bf16.msra.mxu0 %v1517_v23 }
 0x2fe   : > { %1667 = vmatpush.bf16.msra.mxu3 %v1620_v55 }
 0x301   : > { %1462 = vmatpush.bf16.msra.mxu1 %v1413_v58  ;;  %1565 = vmatpush.bf16.msra.mxu0 %v1516_v59 }
 0x302   : > { %1668 = vmatpush.bf16.msra.mxu3 %v1619_v60 }
 0x304   : > { %2364 = vmatmul.msk.bf16.vlgmr.msra.gmra.mxu1 %vm485_vm2, %v2465_v63  ;;  %2375 = vmatmul.msk.bf16.vlgmr.msra.gmra.mxu0 %vm485_vm2, %v2467_v51  ;;  %v1729_v51 = vsel %vm462_vm0, %v2389_v57, 0 }
 0x305   : > { %2386 = vmatmul.msk.bf16.vlgmr.msra.gmra.mxu3 %vm485_vm2, %v2469_v2 }
 0x314   : > { %2365 = vmatmul.msk.bf16.gmra.mxu1 %vm485_vm2, %v2466_v19  ;;  %2376 = vmatmul.msk.bf16.gmra.mxu0 %vm485_vm2, %v2468_v0  ;;  %v1684_v19 = vld [vmem:[%s3228_s7] sm:$0xf] }
 0x315   : > { %2387 = vmatmul.msk.bf16.gmra.mxu3 %vm485_vm2, %v2470_v4  ;;  %v1581_v0 = vld [vmem:[%s3228_s7] sm:$0xf] }
 0x316   : > { %v2471_v4 = vld [vmem:[%s3224_s3] sm:$0xff] }
 0x381   : > { %v1464_v8 = vpop.f32.mrf.mxu1  ;;  %v1567_v10 = vpop.f32.mrf.mxu0 }
 0x382   : > { %v1465_v62 = vadd.f32 %v1464_v8, %v1422_v12  ;;  %v1568_v47 = vadd.f32 %v1567_v10, %v1525_v41  ;;  %v1497_v10 = vld [vmem:[#allocation3] sm:$0xff] }
 0x384   : > { %v1474_v11 = vmax.f32 %v1465_v62, 0.0  ;;  %v1577_v24 = vmax.f32 %v1568_v47, 0.0 }
 0x388   : > { %v1670_v14 = vpop.f32.mrf.mxu3 }
 0x389   : > { %v1466_v32 = vpop.f32.mrf.mxu1  ;;  %v1569_v16 = vpop.f32.mrf.mxu0  ;;  %v1671_v46 = vadd.f32 %v1670_v14, %v1628_v50  ;;  %v1703_v14 = vld [vmem:[#allocation3 + $0x10] sm:$0xff] }
 0x38a   : > { %v1467_v34 = vadd.f32 %v1466_v32, %v1427_v18  ;;  %v1570_v52 = vadd.f32 %v1569_v16, %v1530_v30  ;;  %v1752_v30 = vld [vmem:[#allocation2 + $0x10] sm:$0xff] }
 0x38b   : > { %v1680_v60 = vmax.f32 %v1671_v46, 0.0 }
 0x38c   : > { %v1475_v43 = vmax.f32 %v1467_v34, 0.0  ;;  %v1578_v42 = vmax.f32 %v1570_v52, 0.0  ;;  %v1751_v34 = vld [vmem:[#allocation2 + $0x8] sm:$0xff] }
 0x38e   : > { %v1479_v17 = vpack.c.bf16 %v1475_v43, %v1474_v11  ;;  %v1582_v63 = vpack.c.bf16 %v1578_v42, %v1577_v24  ;;  %v1856_v43 = vld [vmem:[#allocation2 + $0x38] sm:$0xff] }
 0x390   : > { %v1672_v26 = vpop.f32.mrf.mxu3 }
 0x391   : > { %v1469_v35 = vpop.f32.mrf.mxu1  ;;  %v1572_v28 = vpop.f32.mrf.mxu0  ;;  %v1673_v20 = vadd.f32 %v1672_v26, %v1633_v9 }
 0x392   : > { %v1470_v22 = vadd.f32 %v1469_v35, %v1432_v5  ;;  %v1573_v40 = vadd.f32 %v1572_v28, %v1535_v25  ;;  %v2472_v5 = vld [vmem:[%s3224_s3 + $0x8] sm:$0xff] }
 0x393   : > { %v1681_v58 = vmax.f32 %v1673_v20, 0.0  ;;  %v1600_v25 = vld [vmem:[#allocation3 + $0x8] sm:$0xff] }
 0x394   : > { %v1476_v38 = vmax.f32 %v1470_v22, 0.0  ;;  %v1579_v54 = vmax.f32 %v1573_v40, 0.0  ;;  %v1855_v22 = vld [vmem:[#allocation2 + $0x30] sm:$0xff]  ;;  %v1753_v40 = vld [vmem:[#allocation2 + $0x18] sm:$0xff] }
 0x395   : > { %v1685_v2 = vpack.c.bf16 %v1681_v58, %v1680_v60  ;;  %v2477_v60 = vld [vmem:[%s3226_s5] sm:$0xff] }
 0x398   : > { %v1675_v31 = vpop.f32.mrf.mxu3 }
 0x399   : > { %v1471_v61 = vpop.f32.mrf.mxu1  ;;  %v1574_v33 = vpop.f32.mrf.mxu0  ;;  %v1676_v49 = vadd.f32 %v1675_v31, %v1638_v29 }
 0x39a   : > { %v1472_v36 = vadd.f32 %v1471_v61, %v1437_v13  ;;  %v1575_v37 = vadd.f32 %v1574_v33, %v1540_v21  ;;  %v1750_v33 = vld [vmem:[#allocation2] sm:$0xff] }
 0x39b   : > { %v1682_v23 = vmax.f32 %v1676_v49, 0.0 }
 0x39c   : > { %v1477_v39 = vmax.f32 %v1472_v36, 0.0  ;;  %v1580_v45 = vmax.f32 %v1575_v37, 0.0 }
 0x39e   : > { %v1480_v44 = vpack.c.bf16 %v1477_v39, %v1476_v38  ;;  %v1583_v55 = vpack.c.bf16 %v1580_v45, %v1579_v54  ;;  %v1854_v38 = vld [vmem:[#allocation2 + $0x28] sm:$0xff] }
 0x3a0   : > { %v1677_v53 = vpop.f32.mrf.mxu3  ;;  %1490 = vmatpush.bf16.msra.mxu2 %v1480_v44  ;;  %v1853_v44 = vld [vmem:[#allocation2 + $0x20] sm:$0xff] }
 0x3a1   : > { %v1678_v15 = vadd.f32 %v1677_v53, %v1643_v48 }
 0x3a3   : > { %v1683_v27 = vmax.f32 %v1678_v15, 0.0 }
 0x3a4   : > { %1491 = vmatpush.bf16.msra.mxu2 %v1479_v17 }
 0x3a5   : > { %v1686_v59 = vpack.c.bf16 %v1683_v27, %v1682_v23 }
 0x3a7   : > { %1696 = vmatpush.bf16.msrb.mxu1 %v1686_v59  ;;  %2366 = vmatmul.msk.bf16.vlgmr.msra.gmra.mxu2 %vm485_vm2, %v1478_v56  ;;  %v2473_v59 = vld [vmem:[%s3226_s5] sm:$0xff] }
 0x3a8   : > { %1593 = vmatpush.bf16.msrb.mxu2 %v1583_v55 }
 0x3ab   : > { %1697 = vmatpush.bf16.msrb.mxu1 %v1685_v2  ;;  %v2478_v2 = vld [vmem:[%s3226_s5 + $0x8] sm:$0xff] }
 0x3ac   : > { %1594 = vmatpush.bf16.msrb.mxu2 %v1582_v63  ;;  %v2474_v63 = vld [vmem:[%s3226_s5 + $0x8] sm:$0xff] }
 0x3ae   : > { %2388 = vmatmul.msk.bf16.vlgmr.msrb.gmra.mxu1 %vm485_vm2, %v1684_v19  ;;  %v1785_v19 = vpop.permute.xlu0 %1784 }
 0x3b0   : > { %1738 = vmatpush.bf16.msra.mxu2 %v1729_v51  ;;  %v2476_v51 = vld [vmem:[%s3226_s5 + $0x8] sm:$0xff] }
 0x3b7   : > { %2377 = vmatmul.msk.bf16.vlgmr.msrb.gmra.mxu2 %vm485_vm2, %v1581_v0 }
 0x3c7   : > { %2398 = vmatmul.msk.bf16.vlgmr.msra.gmra.mxu2 %vm455_vm1, %v2471_v4  ;;  %v1775_v4 = vpop.permute.xlu2 %1774 }
 0x3d7   : > { %2399 = vmatmul.msk.bf16.gmra.mxu2 %vm455_vm1, %v2472_v5  ;;  %v1790_v5 = vpop.permute.xlu1 %1789 }
 0x42a   : > { %v1493_v8 = vpop.f32.mrf.mxu2 }
 0x42b   : > { %v1498_v12 = vmax.f32 %v1497_v10, %v1493_v8  ;;  %v1699_v13 = vpop.f32.mrf.mxu1 }
 0x42c   : > { %v1704_v32 = vmax.f32 %v1703_v14, %v1699_v13  ;;  %v1780_v13 = vpop.permute.xlu0 %1779  ;;  %v1893_v14 = vpop.permute.xlu2 %1892 }
 0x42d   : > { %1499 = vst.msk [vmem:[#allocation3] sm:$0xff] %vm485_vm2, %v1498_v12 }
 0x42e   : > { %1705 = vst.msk [vmem:[#allocation3 + $0x10] sm:$0xff] %vm485_vm2, %v1704_v32  ;;  %v1888_v32 = vpop.permute.xlu1 %1887 }
 0x432   : > { %v1495_v16 = vpop.f32.mrf.mxu2 }
 0x433   : > { %v1701_v18 = vpop.f32.mrf.mxu1 }
 0x43a   : > { %v1596_v21 = vpop.f32.mrf.mxu2 }
 0x43b   : > { %v1601_v26 = vmax.f32 %v1600_v25, %v1596_v21  ;;  %v1991_v25 = vpop.permute.xlu0 %1990 }
 0x43d   : > { %1602 = vst.msk [vmem:[#allocation3 + $0x8] sm:$0xff] %vm485_vm2, %v1601_v26  ;;  %v1878_v26 = vpop.permute.xlu2 %1877 }
 0x442   : > { %v1598_v35 = vpop.f32.mrf.mxu2 }
 0x44a   : > { %v1740_v28 = vpop.f32.mrf.mxu2 }
 0x44b   : > { %v1754_v37 = vadd.f32 %v1750_v33, %v1740_v28  ;;  %v1857_v9 = vadd.f32 %v1853_v44, %v1740_v28  ;;  %v1960_v15 = vadd.f32 %v1740_v28, %v2903_v3  ;;  %v2475_v3 = vld [vmem:[%s3226_s5] sm:$0xff]  ;;  %v1996_v28 = vpop.permute.xlu1 %1995 }
 0x44d   : > { %v1758_v56 = vmax.f32 %v1754_v37, 0.0  ;;  %v1861_v57 = vmax.f32 %v1857_v9, 0.0 }
 0x452   : > { %v1742_v41 = vpop.f32.mrf.mxu2 }
 0x453   : > { %v1755_v62 = vadd.f32 %v1751_v34, %v1742_v41  ;;  %v1858_v48 = vadd.f32 %v1854_v38, %v1742_v41  ;;  %v1961_v11 = vadd.f32 %v1742_v41, %v2911_v7  ;;  %v1883_v38 = vpop.permute.xlu0 %1882 }
 0x455   : > { %v1759_v46 = vmax.f32 %v1755_v62, 0.0  ;;  %v1862_v17 = vmax.f32 %v1858_v48, 0.0  ;;  %v1965_v27 = vmax.f32 %v1961_v11, 0.0  ;;  %v1981_v11 = vpop.permute.xlu1 %1980 }
 0x457   : > { %v1766_v7 = vpack.c.bf16 %v1759_v46, %v1758_v56  ;;  %v1869_v24 = vpack.c.bf16 %v1862_v17, %v1861_v57 }
 0x45a   : > { %v1745_v29 = vpop.f32.mrf.mxu2 }
 0x45b   : > { %v1756_v31 = vadd.f32 %v1752_v30, %v1745_v29  ;;  %v1859_v61 = vadd.f32 %v1855_v22, %v1745_v29  ;;  %v1962_v36 = vadd.f32 %v1745_v29, %v2976_v6 }
 0x45d   : > { %v1760_v53 = vmax.f32 %v1756_v31, 0.0  ;;  %v1863_v50 = vmax.f32 %v1859_v61, 0.0  ;;  %v1966_v47 = vmax.f32 %v1962_v36, 0.0 }
 0x462   : > { %v1747_v39 = vpop.f32.mrf.mxu2 }
 0x463   : > { %v1757_v52 = vadd.f32 %v1753_v40, %v1747_v39  ;;  %v1860_v49 = vadd.f32 %v1856_v43, %v1747_v39  ;;  %v1963_v45 = vadd.f32 %v1747_v39, %v2972_v1  ;;  %v1964_v1 = vmax.f32 %v1960_v15, 0.0  ;;  %v1986_v43 = vpop.permute.xlu2 %1985 }
 0x465   : > { %v1761_v20 = vmax.f32 %v1757_v52, 0.0  ;;  %v1864_v6 = vmax.f32 %v1860_v49, 0.0  ;;  %v1967_v54 = vmax.f32 %v1963_v45, 0.0  ;;  %v1972_v58 = vpack.c.bf16 %v1965_v27, %v1964_v1 }
 0x467   : > { %v1767_v42 = vpack.c.bf16 %v1761_v20, %v1760_v53  ;;  %v1870_v23 = vpack.c.bf16 %v1864_v6, %v1863_v50  ;;  %v1973_v55 = vpack.c.bf16 %v1967_v54, %v1966_v47 }
 0x469   : > { %1814 = vmatpush.bf16.msrb.mxu0 %v1767_v42  ;;  %1917 = vmatpush.bf16.msrb.mxu3 %v1870_v23  ;;  %v1831_v42 = vld [vmem:[%s3228_s7] sm:$0xf] }
 0x46a   : > { %2020 = vmatpush.bf16.msrb.mxu2 %v1973_v55 }
 0x46d   : > { %1815 = vmatpush.bf16.msrb.mxu0 %v1766_v7  ;;  %1918 = vmatpush.bf16.msrb.mxu3 %v1869_v24  ;;  %v2037_v7 = vld [vmem:[%s3228_s7] sm:$0xf] }
 0x46e   : > { %2021 = vmatpush.bf16.msrb.mxu2 %v1972_v58  ;;  %v1934_v24 = vld [vmem:[%s3228_s7] sm:$0xf] }
 0x470   : > { %2408 = vmatmul.msk.bf16.vlgmr.msrb.gmra.mxu0 %vm485_vm2, %v2473_v59  ;;  %2419 = vmatmul.msk.bf16.vlgmr.msrb.gmra.mxu3 %vm485_vm2, %v2475_v3  ;;  %v1850_v59 = vld [vmem:[#allocation3] sm:$0xff] }
 0x471   : > { %2430 = vmatmul.msk.bf16.vlgmr.msrb.gmra.mxu2 %vm485_vm2, %v2477_v60 }
 0x480   : > { %2409 = vmatmul.msk.bf16.gmra.mxu0 %vm485_vm2, %v2474_v63  ;;  %2420 = vmatmul.msk.bf16.gmra.mxu3 %vm485_vm2, %v2476_v51  ;;  %v2056_v63 = vld [vmem:[#allocation3 + $0x10] sm:$0xff] }
 0x481   : > { %2431 = vmatmul.msk.bf16.gmra.mxu2 %vm485_vm2, %v2478_v2 }
 0x4ed   : > { %v1817_v0 = vpop.f32.mrf.mxu0 }
 0x4ee   : > { %v1818_v61 = vadd.f32 %v1817_v0, %v1775_v4 }
 0x4f0   : > { %v1827_v44 = vmax.f32 %v1818_v61, 0.0 }
 0x4f3   : > { %v1920_v8 = vpop.f32.mrf.mxu3 }
 0x4f4   : > { %v2023_v10 = vpop.f32.mrf.mxu2  ;;  %v1921_v53 = vadd.f32 %v1920_v8, %v1878_v26 }
 0x4f5   : > { %v1819_v12 = vpop.f32.mrf.mxu0  ;;  %v2024_v6 = vadd.f32 %v2023_v10, %v1981_v11 }
 0x4f6   : > { %v1820_v22 = vadd.f32 %v1819_v12, %v1780_v13  ;;  %v1930_v27 = vmax.f32 %v1921_v53, 0.0  ;;  %v1953_v13 = vld [vmem:[#allocation3 + $0x8] sm:$0xff] }
 0x4f7   : > { %v2033_v56 = vmax.f32 %v2024_v6, 0.0 }
 0x4f8   : > { %v1828_v36 = vmax.f32 %v1820_v22, 0.0 }
 0x4fa   : > { %v1832_v50 = vpack.c.bf16 %v1828_v36, %v1827_v44 }
 0x4fb   : > { %v1922_v16 = vpop.f32.mrf.mxu3 }
 0x4fc   : > { %v2025_v18 = vpop.f32.mrf.mxu2  ;;  %v1923_v48 = vadd.f32 %v1922_v16, %v1883_v38 }
 0x4fd   : > { %v1822_v21 = vpop.f32.mrf.mxu0  ;;  %v2026_v45 = vadd.f32 %v2025_v18, %v1986_v43 }
 0x4fe   : > { %v1823_v41 = vadd.f32 %v1822_v21, %v1785_v19  ;;  %v1931_v46 = vmax.f32 %v1923_v48, 0.0  ;;  %v2067_v19 = vpop.permute.xlu0 %2066  ;;  %v2545_v21 = vld [vmem:[%s2759_s24 + $0x10] sm:$0xff] }
 0x4ff   : > { %v2034_v23 = vmax.f32 %v2026_v45, 0.0 }
 0x500   : > { %v1829_v33 = vmax.f32 %v1823_v41, 0.0  ;;  %v1935_v57 = vpack.c.bf16 %v1931_v46, %v1930_v27 }
 0x501   : > { %v2038_v1 = vpack.c.bf16 %v2034_v23, %v2033_v56 }
 0x503   : > { %v1925_v35 = vpop.f32.mrf.mxu3 }
 0x504   : > { %v2028_v29 = vpop.f32.mrf.mxu2  ;;  %v1926_v37 = vadd.f32 %v1925_v35, %v1888_v32  ;;  %v2078_v35 = vpop.permute.xlu1 %2077 }
 0x505   : > { %v1824_v30 = vpop.f32.mrf.mxu0  ;;  %v2029_v39 = vadd.f32 %v2028_v29, %v1991_v25  ;;  %v2546_v29 = vld [vmem:[%s2759_s24 + $0x8] sm:$0xff] }
 0x506   : > { %v1825_v31 = vadd.f32 %v1824_v30, %v1790_v5  ;;  %v1932_v47 = vmax.f32 %v1926_v37, 0.0  ;;  %v2544_v5 = vld [vmem:[%s2759_s24] sm:$0xff] }
 0x507   : > { %v2035_v54 = vmax.f32 %v2029_v39, 0.0 }
 0x508   : > { %v1830_v34 = vmax.f32 %v1825_v31, 0.0 }
 0x50a   : > { %v1833_v62 = vpack.c.bf16 %v1830_v34, %v1829_v33 }
 0x50b   : > { %v1927_v40 = vpop.f32.mrf.mxu3 }
 0x50c   : > { %v1928_v52 = vadd.f32 %v1927_v40, %v1893_v14  ;;  %v2030_v49 = vpop.f32.mrf.mxu2  ;;  %1843 = vmatpush.bf16.msra.mxu1 %v1833_v62  ;;  %v2091_v14 = vpop.permute.xlu2 %2090 }
 0x50d   : > { %v2031_v9 = vadd.f32 %v2030_v49, %v1996_v28 }
 0x50e   : > { %v1933_v20 = vmax.f32 %v1928_v52, 0.0 }
 0x50f   : > { %v2036_v15 = vmax.f32 %v2031_v9, 0.0 }
 0x510   : > { %v1936_v17 = vpack.c.bf16 %v1933_v20, %v1932_v47  ;;  %1844 = vmatpush.bf16.msra.mxu1 %v1832_v50 }
 0x511   : > { %v2039_v55 = vpack.c.bf16 %v2036_v15, %v2035_v54 }
 0x513   : > { %2049 = vmatpush.bf16.msra.mxu0 %v2039_v55  ;;  %2410 = vmatmul.msk.bf16.vlgmr.msra.gmra.mxu1 %vm485_vm2, %v1831_v42 }
 0x514   : > { %1946 = vmatpush.bf16.msrb.mxu1 %v1936_v17 }
 0x517   : > { %2050 = vmatpush.bf16.msra.mxu0 %v2038_v1 }
 0x518   : > { %1947 = vmatpush.bf16.msrb.mxu1 %v1935_v57 }
 0x51a   : > { %2432 = vmatmul.msk.bf16.vlgmr.msra.gmra.mxu0 %vm485_vm2, %v2037_v7 }
 0x523   : > { %2421 = vmatmul.msk.bf16.vlgmr.msrb.gmra.mxu1 %vm485_vm2, %v1934_v24 }
 0x590   : > { %v1846_v58 = vpop.f32.mrf.mxu1 }
 0x591   : > { %v1851_v3 = vmax.f32 %v1850_v59, %v1846_v58 }
 0x593   : > { %1852 = vst.msk [vmem:[#allocation3] sm:$0xff] %vm485_vm2, %v1851_v3 }
 0x597   : > { %v2052_v60 = vpop.f32.mrf.mxu0 }
 0x598   : > { %v2057_v51 = vmax.f32 %v2056_v63, %v2052_v60  ;;  %v1848_v2 = vpop.f32.mrf.mxu1 }
 0x59a   : > { %2058 = vst.msk [vmem:[#allocation3 + $0x10] sm:$0xff] %vm485_vm2, %v2057_v51  ;;  %v2062_v0 = vld [vmem:[#allocation3] sm:$0xff] }
 0x59b   : > { %v2069_v4 = vadd.f32 %v2067_v19, %v2062_v0 }
 0x59d   : > { %v2071_v8 = vadd.f32 %v2544_v5, %v2069_v4 }
 0x59f   : > { %v2054_v10 = vpop.f32.mrf.mxu0  ;;  %2072 = vst.msk [vmem:[%s388_s27] sm:$0xff] %vm485_vm2, %v2071_v8 }
 0x5a0   : > { %v1949_v12 = vpop.f32.mrf.mxu1 }
 0x5a1   : > { %v1954_v32 = vmax.f32 %v1953_v13, %v1949_v12  ;;  %v2086_v16 = vld [vmem:[#allocation3 + $0x10] sm:$0xff] }
 0x5a2   : > { %v2093_v18 = vadd.f32 %v2091_v14, %v2086_v16 }
 0x5a3   : > { %1955 = vst.msk [vmem:[#allocation3 + $0x8] sm:$0xff] %vm485_vm2, %v1954_v32 }
 0x5a4   : > { %v2096_v25 = vadd.f32 %v2545_v21, %v2093_v18 }
 0x5a6   : > { %2436 = vst.msk [vmem:[%s388_s27 + $0x10] sm:$0xff] %vm485_vm2, %v2096_v25 }
 0x5a8   : > { %v1951_v26 = vpop.f32.mrf.mxu1 }
 0x5aa   : > { %v2073_v28 = vld [vmem:[#allocation3 + $0x8] sm:$0xff] }
 0x5ab   : > { %v2080_v41 = vadd.f32 %v2078_v35, %v2073_v28 }
 0x5ad   : > { %v2083_v30 = vadd.f32 %v2546_v29, %v2080_v41 }
 0x5af   : > { %2434 = vst.msk [vmem:[%s388_s27 + $0x8] sm:$0xff] %vm485_vm2, %v2083_v30 }
 0x5b0   : > { %2574 = shalt.err (!%p2571_p5)
}
 0x5b1   : > { %s2629_s24 = smov 128   ;;  %s2630_s25 = smov 8  }
 0x5b2   : > { %2482 = dma.vmem_to_hbm [thread:$0]  (%p2721_p4), %s2114_s16, 384, %s2116_s20, %s2100_s12, %s2629_s24, %s2629_s24, %s2630_s25  }
 0x5b3 PF: > { %p2488_p6 = scmp.ge.s32.totalorder %s2625_s14, 2  ;;  %s2130_s27 = sand.u32 1, %s2605_s30  }
 0x5b4   : > { %s2131_s26 = scalar_lea.sflag [#allocation5], %s2130_s27 }
 0x5b5   : > { %p2485_p7 = pnand %p2488_p6, %p2728_p8 }
 0x5b7   : > { %p2486_p9 = pneg %p2485_p7 }
 0x5b9   : > { %2600 = dma.done.wait (%p2486_p9), %s2131_s26, 384  }
 0x5ba   : > { %2602 = vsyncadd (%p2486_p9), %s2131_s26, 4294966912  ;;  %s22_s14 = sadd.s32 1, %s2625_s14   ;;  %s3235_s19 = sld [smem:[#allocation7_spill]] }
 0x5bb   : > { %p19_p10 = scmp.ge.s32.totalorder %s22_s14, 4   ;;  %s3236_s30 = smov %s2609_s10 }
 0x5bc   : > { %s3237_s10 = smov %s2613_s11  ;;  %s3238_s11 = smov %s2734_s22 }
 0x5bd   : > { %s3239_s12 = smov %s2621_s13  ;;  %21 = sbr.rel (!%p19_p10) target bundleno = 4 (0x4), region = 117 }
 0x5c0   : > { %s3240_s13 = smov %s3235_s19 }
 0x5c2   :  { %2137 = vsyncpa [#allocation5], 1 }
 0x5c3   :  { %2139 = vsyncpa [#allocation5 + $0x1], 1 }

</bundles_post_ra>
